<compile_context>
chip_gen: v7x
topology: tpu7x:2x2x1
jax: 0.10.0
libtpu: 0.0.40
codegen_flags: <defaults>
</compile_context>

<pallas_src>
import jax
import jax.numpy as jnp
from jax.experimental import pallas as pl
from jax.experimental.pallas import tpu as pltpu

D_MODEL = 128
D_FF = 512
D_Q = D_K = D_V = 16
N_HEADS = 8
LN_EPS = 1e-5  # PyTorch nn.LayerNorm default

MATMUL_DTYPE = jnp.bfloat16   # bf16 MXU operands, f32 accumulation
SCORE_DTYPE = jnp.bfloat16    # flip to jnp.float32 if bit-width of probs matters
BIAS_DTYPE = jnp.bfloat16     # masked-distance bias input stream


def _layer_norm(x, gamma, beta):
    mu = jnp.mean(x, axis=-1, keepdims=True)
    var = jnp.mean((x - mu) ** 2, axis=-1, keepdims=True)
    return (x - mu) * jax.lax.rsqrt(var + LN_EPS) * gamma + beta


def geometric_encoder_kernel(
    x_ref, bias_ref,
    wqkv_ref, wo_ref, ln1g_ref, ln1b_ref,
    w1_ref, w2_ref, ln2g_ref, ln2b_ref,
    out_ref, score_ref,
):
    BM, S, D = x_ref.shape
    R = BM * S
    hk = N_HEADS * D_K

    x = x_ref[...].astype(jnp.float32)          # (BM, S, D)
    xm = x.reshape(R, D)                        # row-dense slab for shared matmuls
    bias = bias_ref[...].astype(jnp.float32)    # (BM, S, S); key mask folded in

    # Fused Q/K/V projection: one bf16 MXU pass over x, f32 accumulation.
    qkv = jnp.dot(xm.astype(MATMUL_DTYPE), wqkv_ref[...].astype(MATMUL_DTYPE),
                  preferred_element_type=jnp.float32)           # (R, 3*H*16)

    # Hoist vreg-aligned (128-lane) splits so per-head 16-lane slices come from a
    # single-vreg source instead of the 3-vreg (R, 384) qkv.
    q_all = qkv[:, :hk]
    k_all = qkv[:, hk:2 * hk]
    v_all = qkv[:, 2 * hk:3 * hk]

    scale = jnp.float32(1.0 / (D_K ** 0.5))

    probs = []
    ctx_parts = []
    for h in range(N_HEADS):                                    # static unroll (H=8)
        lo, hi = h * D_Q, (h + 1) * D_Q
        qh = q_all[:, lo:hi].reshape(BM, S, D_Q)
        kh = k_all[:, lo:hi].reshape(BM, S, D_K)
        vh = v_all[:, lo:hi].reshape(BM, S, D_V)

        # TODO(synk): DistanceAttention source not provided; the distance matrix is
        # assumed to be an additive, head-shared bias on the pre-softmax logits.
        s = jnp.einsum('bqd,bkd->bqk', qh.astype(MATMUL_DTYPE),
                       kh.astype(MATMUL_DTYPE),
                       preferred_element_type=jnp.float32)      # (BM, S, S)
        s = s * scale + bias
        s = s - jnp.max(s, axis=-1, keepdims=True)
        e = jnp.exp(s)
        a = e * pl.reciprocal(jnp.sum(e, axis=-1, keepdims=True), approx=True)
        probs.append(a)

        ctx = jnp.einsum('bqk,bkd->bqd', a.astype(MATMUL_DTYPE),
                         vh.astype(MATMUL_DTYPE),
                         preferred_element_type=jnp.float32)    # (BM, S, DV)
        ctx_parts.append(ctx.reshape(R, D_V))

    # Single gathered (bf16) store of the attention probabilities.
    score_ref[...] = jnp.stack(probs, axis=1).astype(score_ref.dtype)

    # Un-folded W_O: one full-depth (R,128)@(128,128) matmul instead of 8 K=16 ones.
    ctx_all = jnp.concatenate(ctx_parts, axis=-1)               # (R, H*DV)
    o = jnp.dot(ctx_all.astype(MATMUL_DTYPE), wo_ref[...].astype(MATMUL_DTYPE),
                preferred_element_type=jnp.float32)             # (R, D)

    h1 = _layer_norm(o + xm, ln1g_ref[...], ln1b_ref[...])      # attn residual + LN

    f = jnp.maximum(
        jnp.dot(h1.astype(MATMUL_DTYPE), w1_ref[...].astype(MATMUL_DTYPE),
                preferred_element_type=jnp.float32), 0.0)
    f2 = jnp.dot(f.astype(MATMUL_DTYPE), w2_ref[...].astype(MATMUL_DTYPE),
                 preferred_element_type=jnp.float32)
    h2 = _layer_norm(f2 + h1, ln2g_ref[...], ln2b_ref[...])     # ffn residual + LN

    out_ref[...] = h2.reshape(BM, S, D).astype(out_ref.dtype)


def _vmem_capacity_bytes():
    """Generation-aware VMEM capacity (v5e/v6e 128 MiB, v7x 64 MiB)."""
    try:
        return int(pltpu.get_tpu_info().vmem_capacity_bytes)
    except Exception:
        return 128 * 1024 * 1024


def _kernel_vmem_bytes(bm, S):
    """Rough upper bound on per-grid-step VMEM: double-buffered pipeline blocks
    plus single-buffered in-kernel intermediates."""
    R = bm * S
    f32 = 4
    bias_b = jnp.dtype(BIAS_DTYPE).itemsize
    score_b = jnp.dtype(SCORE_DTYPE).itemsize
    weights = (D_MODEL * 3 * N_HEADS * D_K + N_HEADS * D_V * D_MODEL
               + D_MODEL * D_FF + D_FF * D_MODEL + 4 * D_MODEL) * f32
    blocks = (R * D_MODEL * f32                 # geoms block
              + bm * S * S * bias_b             # masked-distance bias block
              + R * D_MODEL * f32               # out block
              + bm * N_HEADS * S * S * score_b  # score block
              + weights)
    interm = f32 * (
        R * D_MODEL                             # x f32 copy
        + 2 * R * 3 * N_HEADS * D_K             # qkv + q/k/v splits
        + 4 * bm * S * S                        # s/e/a per-head temporaries
        + bm * N_HEADS * S * S                  # stacked probs (f32 pre-cast)
        + R * D_MODEL                           # ctx_all
        + 3 * R * D_MODEL                       # o, h1, residual temps
        + R * D_FF                              # FFN activation
    )
    return 2 * blocks + interm


def _pick_bm(B, S, vmem_limit_bytes, target_rows=512):
    """Largest divisor of B whose estimated per-step VMEM fits the budget, keeping
    >=2 grid steps (v7x has 2 TensorCores; also gives the DMA pipeline work) and
    preferring BM*S >= 512 rows so the 256-wide v6e/v7x MXU sees full tiles."""
    budget = int(0.8 * vmem_limit_bytes)
    best = 1
    for bm in range(1, B + 1):
        if B % bm:
            continue
        if B >= 2 and B // bm < 2:
            continue
        if _kernel_vmem_bytes(bm, S) > budget:
            continue
        best = bm
        if bm * S >= target_rows:
            break
    # TODO(synk): if even bm=1 overflows VMEM (very large S) this tiling is not
    # enough; that regime needs S-tiling of the attention, not batch tiling.
    return best


def geometric_encoder_layer(geoms, distances, mask, params):
    wq, wk, wv, wo, g1, b1, w1, w2, g2, b2 = params
    B, S, D = geoms.shape
    assert D == D_MODEL

    # Host-side prep (tiny, one pass): fuse QKV weights; fold the key-padding mask
    # into the additive distance bias; ship the bias as bf16 (largest input stream).
    w_qkv = jnp.concatenate([wq, wk, wv], axis=1)                    # (D, 3*H*16)
    bias = jnp.where(mask > 0.5, jnp.float32(-1e9),
                     distances.astype(jnp.float32)).astype(BIAS_DTYPE)

    vmem_cap = _vmem_capacity_bytes()
    vmem_limit = min(int(0.75 * vmem_cap), 100 * 1024 * 1024)
    BM = _pick_bm(B, S, vmem_limit)

    rep = lambda b: (0, 0)
    in_specs = [
        pl.BlockSpec((BM, S, D), lambda b: (b, 0, 0)),               # geoms
        pl.BlockSpec((BM, S, S), lambda b: (b, 0, 0)),               # masked dist bias
        pl.BlockSpec((D, 3 * N_HEADS * D_K), rep),                   # fused W_QKV
        pl.BlockSpec((N_HEADS * D_V, D), rep),                       # W_O
        pl.BlockSpec((1, D), rep), pl.BlockSpec((1, D), rep),        # LN1 gamma/beta
        pl.BlockSpec((D, D_FF), rep), pl.BlockSpec((D_FF, D), rep),  # FFN W1/W2
        pl.BlockSpec((1, D), rep), pl.BlockSpec((1, D), rep),        # LN2 gamma/beta
    ]
    out_specs = (
        pl.BlockSpec((BM, S, D), lambda b: (b, 0, 0)),
        pl.BlockSpec((BM, N_HEADS, S, S), lambda b: (b, 0, 0, 0)),
    )
    out_shapes = (
        jax.ShapeDtypeStruct((B, S, D), jnp.float32),
        jax.ShapeDtypeStruct((B, N_HEADS, S, S), SCORE_DTYPE),
    )

    return pl.pallas_call(
        geometric_encoder_kernel,
        out_shape=out_shapes,
        grid_spec=pltpu.PrefetchScalarGridSpec(
            num_scalar_prefetch=0,
            grid=(B // BM,),
            in_specs=in_specs,
            out_specs=out_specs,
        ),
        compiler_params=pltpu.CompilerParams(
            dimension_semantics=("parallel",),    # batch blocks are independent
            vmem_limit_bytes=vmem_limit),
    )(geoms, bias, w_qkv, wo, g1, b1, w1, w2, g2, b2)


def reference(geoms, distances, mask, params):
    """Pure-JAX reference of the same semantics (for a correctness check)."""
    wq, wk, wv, wo, g1, b1, w1, w2, g2, b2 = params
    B, S, D = geoms.shape
    q = (geoms @ wq).reshape(B, S, N_HEADS, D_Q).transpose(0, 2, 1, 3)
    k = (geoms @ wk).reshape(B, S, N_HEADS, D_K).transpose(0, 2, 1, 3)
    v = (geoms @ wv).reshape(B, S, N_HEADS, D_V).transpose(0, 2, 1, 3)
    s = jnp.einsum('bhqd,bhkd->bhqk', q, k) / jnp.sqrt(jnp.float32(D_K))
    s = s + distances[:, None, :, :]
    s = jnp.where(mask[:, None, :, :] > 0.5, -1e9, s)
    a = jax.nn.softmax(s, axis=-1)
    ctx = jnp.einsum('bhqk,bhkd->bhqd', a, v)
    ctx = ctx.transpose(0, 2, 1, 3).reshape(B, S, N_HEADS * D_V)
    o = ctx @ wo

    def ln(x, g, b):
        mu = jnp.mean(x, axis=-1, keepdims=True)
        var = jnp.mean((x - mu) ** 2, axis=-1, keepdims=True)
        return (x - mu) * jax.lax.rsqrt(var + LN_EPS) * g + b

    h1 = ln(o + geoms, g1[0], b1[0])
    f = jax.nn.relu(h1 @ w1) @ w2
    h2 = ln(f + h1, g2[0], b2[0])
    return h2, a


def make_params(key):
    ks = jax.random.split(key, 6)
    scale = 0.05
    wq = scale * jax.random.normal(ks[0], (D_MODEL, N_HEADS * D_Q), jnp.float32)
    wk = scale * jax.random.normal(ks[1], (D_MODEL, N_HEADS * D_K), jnp.float32)
    wv = scale * jax.random.normal(ks[2], (D_MODEL, N_HEADS * D_V), jnp.float32)
    wo = scale * jax.random.normal(ks[3], (N_HEADS * D_V, D_MODEL), jnp.float32)
    g1 = jnp.ones((1, D_MODEL), jnp.float32)
    b1 = jnp.zeros((1, D_MODEL), jnp.float32)
    w1 = scale * jax.random.normal(ks[4], (D_MODEL, D_FF), jnp.float32)
    w2 = scale * jax.random.normal(ks[5], (D_FF, D_MODEL), jnp.float32)
    g2 = jnp.ones((1, D_MODEL), jnp.float32)
    b2 = jnp.zeros((1, D_MODEL), jnp.float32)
    return (wq, wk, wv, wo, g1, b1, w1, w2, g2, b2)


if __name__ == "__main__":
    B, S = 2, 8
    key = jax.random.PRNGKey(0)
    k_g, k_d, k_p = jax.random.split(key, 3)

    geoms = jax.random.normal(k_g, (B, S, D_MODEL), jnp.float32)
    distances = jax.random.uniform(k_d, (B, S, S), jnp.float32)
    # padding-style key mask: last 2 key positions masked out (1.0 = masked)
    mask = jnp.zeros((B, S, S), jnp.float32).at[:, :, S - 2:].set(1.0)

    params = make_params(k_p)

    out, score = geometric_encoder_layer(geoms, distances, mask, params)
    out, score = jax.block_until_ready((out, score))

    ref_out, ref_score = reference(geoms, distances, mask, params)
    assert out.shape == (B, S, D_MODEL) and score.shape == (B, N_HEADS, S, S)
    # Tolerances account for bf16 MXU operands / bf16 bias+score streams (f32
    # accumulation kept) and the approximate EUP reciprocal in the softmax.
    assert jnp.allclose(out, ref_out, atol=3e-2, rtol=3e-2), \
        float(jnp.max(jnp.abs(out - ref_out)))
    score_f32 = score.astype(jnp.float32)
    assert jnp.allclose(score_f32, ref_score, atol=2e-2, rtol=2e-2), \
        float(jnp.max(jnp.abs(score_f32 - ref_score)))

    print("KERNEL_OK")
</pallas_src>

<mosaic_0001>
module attributes {stable_mosaic.version = 11 : i64} {
  func.func @geometric_encoder_kernel(%arg0: i32, %arg1: memref<1x8x128xf32, #tpu.memory_space<vmem>>, %arg2: memref<1x8x8xbf16, #tpu.memory_space<vmem>>, %arg3: memref<128x384xf32, #tpu.memory_space<vmem>>, %arg4: memref<128x128xf32, #tpu.memory_space<vmem>>, %arg5: memref<1x128xf32, #tpu.memory_space<vmem>>, %arg6: memref<1x128xf32, #tpu.memory_space<vmem>>, %arg7: memref<128x512xf32, #tpu.memory_space<vmem>>, %arg8: memref<512x128xf32, #tpu.memory_space<vmem>>, %arg9: memref<1x128xf32, #tpu.memory_space<vmem>>, %arg10: memref<1x128xf32, #tpu.memory_space<vmem>>, %arg11: memref<1x8x128xf32, #tpu.memory_space<vmem>>, %arg12: memref<1x8x8x8xbf16, #tpu.memory_space<vmem>>) attributes {dimension_semantics = [#tpu.dimension_semantics<parallel>], iteration_bounds = array<i64: 2>, scalar_prefetch = 0 : i64, scratch_operands = 0 : i64, tpu.core_type = #tpu.core_type<tc>, window_params = [{transform_indices = @transform_0, window_bounds = array<i64: 1, 8, 128>}, {transform_indices = @transform_1, window_bounds = array<i64: 1, 8, 8>}, {pipeline_mode = #tpu.pipeline_mode<synchronous>, transform_indices = @transform_2, window_bounds = array<i64: 128, 384>}, {pipeline_mode = #tpu.pipeline_mode<synchronous>, transform_indices = @transform_3, window_bounds = array<i64: 128, 128>}, {pipeline_mode = #tpu.pipeline_mode<synchronous>, transform_indices = @transform_4, window_bounds = array<i64: 1, 128>}, {pipeline_mode = #tpu.pipeline_mode<synchronous>, transform_indices = @transform_5, window_bounds = array<i64: 1, 128>}, {pipeline_mode = #tpu.pipeline_mode<synchronous>, transform_indices = @transform_6, window_bounds = array<i64: 128, 512>}, {pipeline_mode = #tpu.pipeline_mode<synchronous>, transform_indices = @transform_7, window_bounds = array<i64: 512, 128>}, {pipeline_mode = #tpu.pipeline_mode<synchronous>, transform_indices = @transform_8, window_bounds = array<i64: 1, 128>}, {pipeline_mode = #tpu.pipeline_mode<synchronous>, transform_indices = @transform_9, window_bounds = array<i64: 1, 128>}, {transform_indices = @transform_10, window_bounds = array<i64: 1, 8, 128>}, {transform_indices = @transform_11, window_bounds = array<i64: 1, 8, 8, 8>}]} {
    %c0 = arith.constant 0 : index
    %c0_0 = arith.constant 0 : index
    %c0_1 = arith.constant 0 : index
    %0 = vector.load %arg1[%c0, %c0_0, %c0_1] : memref<1x8x128xf32, #tpu.memory_space<vmem>>, vector<1x8x128xf32>
    %1 = vector.shape_cast %0 : vector<1x8x128xf32> to vector<8x128xf32>
    %c0_2 = arith.constant 0 : index
    %c0_3 = arith.constant 0 : index
    %c0_4 = arith.constant 0 : index
    %2 = vector.load %arg2[%c0_2, %c0_3, %c0_4] : memref<1x8x8xbf16, #tpu.memory_space<vmem>>, vector<1x8x8xbf16>
    %3 = arith.extf %2 : vector<1x8x8xbf16> to vector<1x8x8xf32>
    %4 = arith.truncf %1 : vector<8x128xf32> to vector<8x128xbf16>
    %c0_5 = arith.constant 0 : index
    %c0_6 = arith.constant 0 : index
    %5 = vector.load %arg3[%c0_5, %c0_6] : memref<128x384xf32, #tpu.memory_space<vmem>>, vector<128x384xf32>
    %6 = arith.truncf %5 : vector<128x384xf32> to vector<128x384xbf16>
    %cst = arith.constant dense<0.000000e+00> : vector<8x384xf32>
    %7 = tpu.matmul %4, %6, %cst {dimension_numbers = #tpu.dot_dimension_numbers<[1], [0], [0], [1], [0, 0, 1, 1], [], []>} : vector<8x128xbf16>, vector<128x384xbf16>, vector<8x384xf32> -> vector<8x384xf32>
    %8 = vector.extract_strided_slice %7 {offsets = [0, 0], sizes = [8, 128], strides = [1, 1]} : vector<8x384xf32> to vector<8x128xf32>
    %9 = vector.extract_strided_slice %7 {offsets = [0, 128], sizes = [8, 128], strides = [1, 1]} : vector<8x384xf32> to vector<8x128xf32>
    %10 = vector.extract_strided_slice %7 {offsets = [0, 256], sizes = [8, 128], strides = [1, 1]} : vector<8x384xf32> to vector<8x128xf32>
    %11 = vector.extract_strided_slice %8 {offsets = [0, 0], sizes = [8, 16], strides = [1, 1]} : vector<8x128xf32> to vector<8x16xf32>
    %12 = vector.shape_cast %11 : vector<8x16xf32> to vector<1x8x16xf32>
    %13 = vector.extract_strided_slice %9 {offsets = [0, 0], sizes = [8, 16], strides = [1, 1]} : vector<8x128xf32> to vector<8x16xf32>
    %14 = vector.shape_cast %13 : vector<8x16xf32> to vector<1x8x16xf32>
    %15 = vector.extract_strided_slice %10 {offsets = [0, 0], sizes = [8, 16], strides = [1, 1]} : vector<8x128xf32> to vector<8x16xf32>
    %16 = vector.shape_cast %15 : vector<8x16xf32> to vector<1x8x16xf32>
    %17 = arith.truncf %12 : vector<1x8x16xf32> to vector<1x8x16xbf16>
    %18 = arith.truncf %14 : vector<1x8x16xf32> to vector<1x8x16xbf16>
    "tpu.trace_start"() <{level = 10 : i32, message = "bqd,bkd->bqk"}> : () -> ()
    %cst_7 = arith.constant dense<0.000000e+00> : vector<1x8x8xf32>
    %19 = tpu.matmul %17, %18, %cst_7 {dimension_numbers = #tpu.dot_dimension_numbers<[2], [2], [1], [1], [0, 0, 0, 1, 1, 1], [0], [0]>} : vector<1x8x16xbf16>, vector<1x8x16xbf16>, vector<1x8x8xf32> -> vector<1x8x8xf32>
    "tpu.trace_stop"() : () -> ()
    %cst_8 = arith.constant 2.500000e-01 : f32
    %20 = vector.broadcast %cst_8 : f32 to vector<1x8x8xf32>
    %21 = arith.mulf %19, %20 : vector<1x8x8xf32>
    %22 = arith.addf %21, %3 : vector<1x8x8xf32>
    %cst_9 = arith.constant dense<0xFF800000> : vector<1x8xf32>
    %23 = vector.multi_reduction <maximumf>, %22, %cst_9 [2] : vector<1x8x8xf32> to vector<1x8xf32>
    %24 = vector.shape_cast %23 : vector<1x8xf32> to vector<1x8x1xf32>
    %25 = vector.broadcast %24 : vector<1x8x1xf32> to vector<1x8x8xf32>
    %26 = arith.subf %22, %25 : vector<1x8x8xf32>
    %27 = math.exp %26 : vector<1x8x8xf32>
    %cst_10 = arith.constant dense<0.000000e+00> : vector<1x8xf32>
    %28 = vector.multi_reduction <add>, %27, %cst_10 [2] : vector<1x8x8xf32> to vector<1x8xf32>
    %29 = vector.shape_cast %28 : vector<1x8xf32> to vector<1x8x1xf32>
    %30 = tpu.reciprocal %29 {approx = true} : vector<1x8x1xf32> -> vector<1x8x1xf32>
    %31 = vector.broadcast %30 : vector<1x8x1xf32> to vector<1x8x8xf32>
    %32 = arith.mulf %27, %31 : vector<1x8x8xf32>
    %33 = arith.truncf %32 : vector<1x8x8xf32> to vector<1x8x8xbf16>
    %34 = arith.truncf %16 : vector<1x8x16xf32> to vector<1x8x16xbf16>
    "tpu.trace_start"() <{level = 10 : i32, message = "bqk,bkd->bqd"}> : () -> ()
    %cst_11 = arith.constant dense<0.000000e+00> : vector<1x8x16xf32>
    %35 = tpu.matmul %33, %34, %cst_11 {dimension_numbers = #tpu.dot_dimension_numbers<[2], [1], [1], [2], [0, 0, 0, 1, 1, 2], [0], [0]>} : vector<1x8x8xbf16>, vector<1x8x16xbf16>, vector<1x8x16xf32> -> vector<1x8x16xf32>
    "tpu.trace_stop"() : () -> ()
    %36 = vector.shape_cast %35 : vector<1x8x16xf32> to vector<8x16xf32>
    %37 = vector.extract_strided_slice %8 {offsets = [0, 16], sizes = [8, 16], strides = [1, 1]} : vector<8x128xf32> to vector<8x16xf32>
    %38 = vector.shape_cast %37 : vector<8x16xf32> to vector<1x8x16xf32>
    %39 = vector.extract_strided_slice %9 {offsets = [0, 16], sizes = [8, 16], strides = [1, 1]} : vector<8x128xf32> to vector<8x16xf32>
    %40 = vector.shape_cast %39 : vector<8x16xf32> to vector<1x8x16xf32>
    %41 = vector.extract_strided_slice %10 {offsets = [0, 16], sizes = [8, 16], strides = [1, 1]} : vector<8x128xf32> to vector<8x16xf32>
    %42 = vector.shape_cast %41 : vector<8x16xf32> to vector<1x8x16xf32>
    %43 = arith.truncf %38 : vector<1x8x16xf32> to vector<1x8x16xbf16>
    %44 = arith.truncf %40 : vector<1x8x16xf32> to vector<1x8x16xbf16>
    "tpu.trace_start"() <{level = 10 : i32, message = "bqd,bkd->bqk"}> : () -> ()
    %cst_12 = arith.constant dense<0.000000e+00> : vector<1x8x8xf32>
    %45 = tpu.matmul %43, %44, %cst_12 {dimension_numbers = #tpu.dot_dimension_numbers<[2], [2], [1], [1], [0, 0, 0, 1, 1, 1], [0], [0]>} : vector<1x8x16xbf16>, vector<1x8x16xbf16>, vector<1x8x8xf32> -> vector<1x8x8xf32>
    "tpu.trace_stop"() : () -> ()
    %cst_13 = arith.constant 2.500000e-01 : f32
    %46 = vector.broadcast %cst_13 : f32 to vector<1x8x8xf32>
    %47 = arith.mulf %45, %46 : vector<1x8x8xf32>
    %48 = arith.addf %47, %3 : vector<1x8x8xf32>
    %cst_14 = arith.constant dense<0xFF800000> : vector<1x8xf32>
    %49 = vector.multi_reduction <maximumf>, %48, %cst_14 [2] : vector<1x8x8xf32> to vector<1x8xf32>
    %50 = vector.shape_cast %49 : vector<1x8xf32> to vector<1x8x1xf32>
    %51 = vector.broadcast %50 : vector<1x8x1xf32> to vector<1x8x8xf32>
    %52 = arith.subf %48, %51 : vector<1x8x8xf32>
    %53 = math.exp %52 : vector<1x8x8xf32>
    %cst_15 = arith.constant dense<0.000000e+00> : vector<1x8xf32>
    %54 = vector.multi_reduction <add>, %53, %cst_15 [2] : vector<1x8x8xf32> to vector<1x8xf32>
    %55 = vector.shape_cast %54 : vector<1x8xf32> to vector<1x8x1xf32>
    %56 = tpu.reciprocal %55 {approx = true} : vector<1x8x1xf32> -> vector<1x8x1xf32>
    %57 = vector.broadcast %56 : vector<1x8x1xf32> to vector<1x8x8xf32>
    %58 = arith.mulf %53, %57 : vector<1x8x8xf32>
    %59 = arith.truncf %58 : vector<1x8x8xf32> to vector<1x8x8xbf16>
    %60 = arith.truncf %42 : vector<1x8x16xf32> to vector<1x8x16xbf16>
    "tpu.trace_start"() <{level = 10 : i32, message = "bqk,bkd->bqd"}> : () -> ()
    %cst_16 = arith.constant dense<0.000000e+00> : vector<1x8x16xf32>
    %61 = tpu.matmul %59, %60, %cst_16 {dimension_numbers = #tpu.dot_dimension_numbers<[2], [1], [1], [2], [0, 0, 0, 1, 1, 2], [0], [0]>} : vector<1x8x8xbf16>, vector<1x8x16xbf16>, vector<1x8x16xf32> -> vector<1x8x16xf32>
    "tpu.trace_stop"() : () -> ()
    %62 = vector.shape_cast %61 : vector<1x8x16xf32> to vector<8x16xf32>
    %63 = vector.extract_strided_slice %8 {offsets = [0, 32], sizes = [8, 16], strides = [1, 1]} : vector<8x128xf32> to vector<8x16xf32>
    %64 = vector.shape_cast %63 : vector<8x16xf32> to vector<1x8x16xf32>
    %65 = vector.extract_strided_slice %9 {offsets = [0, 32], sizes = [8, 16], strides = [1, 1]} : vector<8x128xf32> to vector<8x16xf32>
    %66 = vector.shape_cast %65 : vector<8x16xf32> to vector<1x8x16xf32>
    %67 = vector.extract_strided_slice %10 {offsets = [0, 32], sizes = [8, 16], strides = [1, 1]} : vector<8x128xf32> to vector<8x16xf32>
    %68 = vector.shape_cast %67 : vector<8x16xf32> to vector<1x8x16xf32>
    %69 = arith.truncf %64 : vector<1x8x16xf32> to vector<1x8x16xbf16>
    %70 = arith.truncf %66 : vector<1x8x16xf32> to vector<1x8x16xbf16>
    "tpu.trace_start"() <{level = 10 : i32, message = "bqd,bkd->bqk"}> : () -> ()
    %cst_17 = arith.constant dense<0.000000e+00> : vector<1x8x8xf32>
    %71 = tpu.matmul %69, %70, %cst_17 {dimension_numbers = #tpu.dot_dimension_numbers<[2], [2], [1], [1], [0, 0, 0, 1, 1, 1], [0], [0]>} : vector<1x8x16xbf16>, vector<1x8x16xbf16>, vector<1x8x8xf32> -> vector<1x8x8xf32>
    "tpu.trace_stop"() : () -> ()
    %cst_18 = arith.constant 2.500000e-01 : f32
    %72 = vector.broadcast %cst_18 : f32 to vector<1x8x8xf32>
    %73 = arith.mulf %71, %72 : vector<1x8x8xf32>
    %74 = arith.addf %73, %3 : vector<1x8x8xf32>
    %cst_19 = arith.constant dense<0xFF800000> : vector<1x8xf32>
    %75 = vector.multi_reduction <maximumf>, %74, %cst_19 [2] : vector<1x8x8xf32> to vector<1x8xf32>
    %76 = vector.shape_cast %75 : vector<1x8xf32> to vector<1x8x1xf32>
    %77 = vector.broadcast %76 : vector<1x8x1xf32> to vector<1x8x8xf32>
    %78 = arith.subf %74, %77 : vector<1x8x8xf32>
    %79 = math.exp %78 : vector<1x8x8xf32>
    %cst_20 = arith.constant dense<0.000000e+00> : vector<1x8xf32>
    %80 = vector.multi_reduction <add>, %79, %cst_20 [2] : vector<1x8x8xf32> to vector<1x8xf32>
    %81 = vector.shape_cast %80 : vector<1x8xf32> to vector<1x8x1xf32>
    %82 = tpu.reciprocal %81 {approx = true} : vector<1x8x1xf32> -> vector<1x8x1xf32>
    %83 = vector.broadcast %82 : vector<1x8x1xf32> to vector<1x8x8xf32>
    %84 = arith.mulf %79, %83 : vector<1x8x8xf32>
    %85 = arith.truncf %84 : vector<1x8x8xf32> to vector<1x8x8xbf16>
    %86 = arith.truncf %68 : vector<1x8x16xf32> to vector<1x8x16xbf16>
    "tpu.trace_start"() <{level = 10 : i32, message = "bqk,bkd->bqd"}> : () -> ()
    %cst_21 = arith.constant dense<0.000000e+00> : vector<1x8x16xf32>
    %87 = tpu.matmul %85, %86, %cst_21 {dimension_numbers = #tpu.dot_dimension_numbers<[2], [1], [1], [2], [0, 0, 0, 1, 1, 2], [0], [0]>} : vector<1x8x8xbf16>, vector<1x8x16xbf16>, vector<1x8x16xf32> -> vector<1x8x16xf32>
    "tpu.trace_stop"() : () -> ()
    %88 = vector.shape_cast %87 : vector<1x8x16xf32> to vector<8x16xf32>
    %89 = vector.extract_strided_slice %8 {offsets = [0, 48], sizes = [8, 16], strides = [1, 1]} : vector<8x128xf32> to vector<8x16xf32>
    %90 = vector.shape_cast %89 : vector<8x16xf32> to vector<1x8x16xf32>
    %91 = vector.extract_strided_slice %9 {offsets = [0, 48], sizes = [8, 16], strides = [1, 1]} : vector<8x128xf32> to vector<8x16xf32>
    %92 = vector.shape_cast %91 : vector<8x16xf32> to vector<1x8x16xf32>
    %93 = vector.extract_strided_slice %10 {offsets = [0, 48], sizes = [8, 16], strides = [1, 1]} : vector<8x128xf32> to vector<8x16xf32>
    %94 = vector.shape_cast %93 : vector<8x16xf32> to vector<1x8x16xf32>
    %95 = arith.truncf %90 : vector<1x8x16xf32> to vector<1x8x16xbf16>
    %96 = arith.truncf %92 : vector<1x8x16xf32> to vector<1x8x16xbf16>
    "tpu.trace_start"() <{level = 10 : i32, message = "bqd,bkd->bqk"}> : () -> ()
    %cst_22 = arith.constant dense<0.000000e+00> : vector<1x8x8xf32>
    %97 = tpu.matmul %95, %96, %cst_22 {dimension_numbers = #tpu.dot_dimension_numbers<[2], [2], [1], [1], [0, 0, 0, 1, 1, 1], [0], [0]>} : vector<1x8x16xbf16>, vector<1x8x16xbf16>, vector<1x8x8xf32> -> vector<1x8x8xf32>
    "tpu.trace_stop"() : () -> ()
    %cst_23 = arith.constant 2.500000e-01 : f32
    %98 = vector.broadcast %cst_23 : f32 to vector<1x8x8xf32>
    %99 = arith.mulf %97, %98 : vector<1x8x8xf32>
    %100 = arith.addf %99, %3 : vector<1x8x8xf32>
    %cst_24 = arith.constant dense<0xFF800000> : vector<1x8xf32>
    %101 = vector.multi_reduction <maximumf>, %100, %cst_24 [2] : vector<1x8x8xf32> to vector<1x8xf32>
    %102 = vector.shape_cast %101 : vector<1x8xf32> to vector<1x8x1xf32>
    %103 = vector.broadcast %102 : vector<1x8x1xf32> to vector<1x8x8xf32>
    %104 = arith.subf %100, %103 : vector<1x8x8xf32>
    %105 = math.exp %104 : vector<1x8x8xf32>
    %cst_25 = arith.constant dense<0.000000e+00> : vector<1x8xf32>
    %106 = vector.multi_reduction <add>, %105, %cst_25 [2] : vector<1x8x8xf32> to vector<1x8xf32>
    %107 = vector.shape_cast %106 : vector<1x8xf32> to vector<1x8x1xf32>
    %108 = tpu.reciprocal %107 {approx = true} : vector<1x8x1xf32> -> vector<1x8x1xf32>
    %109 = vector.broadcast %108 : vector<1x8x1xf32> to vector<1x8x8xf32>
    %110 = arith.mulf %105, %109 : vector<1x8x8xf32>
    %111 = arith.truncf %110 : vector<1x8x8xf32> to vector<1x8x8xbf16>
    %112 = arith.truncf %94 : vector<1x8x16xf32> to vector<1x8x16xbf16>
    "tpu.trace_start"() <{level = 10 : i32, message = "bqk,bkd->bqd"}> : () -> ()
    %cst_26 = arith.constant dense<0.000000e+00> : vector<1x8x16xf32>
    %113 = tpu.matmul %111, %112, %cst_26 {dimension_numbers = #tpu.dot_dimension_numbers<[2], [1], [1], [2], [0, 0, 0, 1, 1, 2], [0], [0]>} : vector<1x8x8xbf16>, vector<1x8x16xbf16>, vector<1x8x16xf32> -> vector<1x8x16xf32>
    "tpu.trace_stop"() : () -> ()
    %114 = vector.shape_cast %113 : vector<1x8x16xf32> to vector<8x16xf32>
    %115 = vector.extract_strided_slice %8 {offsets = [0, 64], sizes = [8, 16], strides = [1, 1]} : vector<8x128xf32> to vector<8x16xf32>
    %116 = vector.shape_cast %115 : vector<8x16xf32> to vector<1x8x16xf32>
    %117 = vector.extract_strided_slice %9 {offsets = [0, 64], sizes = [8, 16], strides = [1, 1]} : vector<8x128xf32> to vector<8x16xf32>
    %118 = vector.shape_cast %117 : vector<8x16xf32> to vector<1x8x16xf32>
    %119 = vector.extract_strided_slice %10 {offsets = [0, 64], sizes = [8, 16], strides = [1, 1]} : vector<8x128xf32> to vector<8x16xf32>
    %120 = vector.shape_cast %119 : vector<8x16xf32> to vector<1x8x16xf32>
    %121 = arith.truncf %116 : vector<1x8x16xf32> to vector<1x8x16xbf16>
    %122 = arith.truncf %118 : vector<1x8x16xf32> to vector<1x8x16xbf16>
    "tpu.trace_start"() <{level = 10 : i32, message = "bqd,bkd->bqk"}> : () -> ()
    %cst_27 = arith.constant dense<0.000000e+00> : vector<1x8x8xf32>
    %123 = tpu.matmul %121, %122, %cst_27 {dimension_numbers = #tpu.dot_dimension_numbers<[2], [2], [1], [1], [0, 0, 0, 1, 1, 1], [0], [0]>} : vector<1x8x16xbf16>, vector<1x8x16xbf16>, vector<1x8x8xf32> -> vector<1x8x8xf32>
    "tpu.trace_stop"() : () -> ()
    %cst_28 = arith.constant 2.500000e-01 : f32
    %124 = vector.broadcast %cst_28 : f32 to vector<1x8x8xf32>
    %125 = arith.mulf %123, %124 : vector<1x8x8xf32>
    %126 = arith.addf %125, %3 : vector<1x8x8xf32>
    %cst_29 = arith.constant dense<0xFF800000> : vector<1x8xf32>
    %127 = vector.multi_reduction <maximumf>, %126, %cst_29 [2] : vector<1x8x8xf32> to vector<1x8xf32>
    %128 = vector.shape_cast %127 : vector<1x8xf32> to vector<1x8x1xf32>
    %129 = vector.broadcast %128 : vector<1x8x1xf32> to vector<1x8x8xf32>
    %130 = arith.subf %126, %129 : vector<1x8x8xf32>
    %131 = math.exp %130 : vector<1x8x8xf32>
    %cst_30 = arith.constant dense<0.000000e+00> : vector<1x8xf32>
    %132 = vector.multi_reduction <add>, %131, %cst_30 [2] : vector<1x8x8xf32> to vector<1x8xf32>
    %133 = vector.shape_cast %132 : vector<1x8xf32> to vector<1x8x1xf32>
    %134 = tpu.reciprocal %133 {approx = true} : vector<1x8x1xf32> -> vector<1x8x1xf32>
    %135 = vector.broadcast %134 : vector<1x8x1xf32> to vector<1x8x8xf32>
    %136 = arith.mulf %131, %135 : vector<1x8x8xf32>
    %137 = arith.truncf %136 : vector<1x8x8xf32> to vector<1x8x8xbf16>
    %138 = arith.truncf %120 : vector<1x8x16xf32> to vector<1x8x16xbf16>
    "tpu.trace_start"() <{level = 10 : i32, message = "bqk,bkd->bqd"}> : () -> ()
    %cst_31 = arith.constant dense<0.000000e+00> : vector<1x8x16xf32>
    %139 = tpu.matmul %137, %138, %cst_31 {dimension_numbers = #tpu.dot_dimension_numbers<[2], [1], [1], [2], [0, 0, 0, 1, 1, 2], [0], [0]>} : vector<1x8x8xbf16>, vector<1x8x16xbf16>, vector<1x8x16xf32> -> vector<1x8x16xf32>
    "tpu.trace_stop"() : () -> ()
    %140 = vector.shape_cast %139 : vector<1x8x16xf32> to vector<8x16xf32>
    %141 = vector.extract_strided_slice %8 {offsets = [0, 80], sizes = [8, 16], strides = [1, 1]} : vector<8x128xf32> to vector<8x16xf32>
    %142 = vector.shape_cast %141 : vector<8x16xf32> to vector<1x8x16xf32>
    %143 = vector.extract_strided_slice %9 {offsets = [0, 80], sizes = [8, 16], strides = [1, 1]} : vector<8x128xf32> to vector<8x16xf32>
    %144 = vector.shape_cast %143 : vector<8x16xf32> to vector<1x8x16xf32>
    %145 = vector.extract_strided_slice %10 {offsets = [0, 80], sizes = [8, 16], strides = [1, 1]} : vector<8x128xf32> to vector<8x16xf32>
    %146 = vector.shape_cast %145 : vector<8x16xf32> to vector<1x8x16xf32>
    %147 = arith.truncf %142 : vector<1x8x16xf32> to vector<1x8x16xbf16>
    %148 = arith.truncf %144 : vector<1x8x16xf32> to vector<1x8x16xbf16>
    "tpu.trace_start"() <{level = 10 : i32, message = "bqd,bkd->bqk"}> : () -> ()
    %cst_32 = arith.constant dense<0.000000e+00> : vector<1x8x8xf32>
    %149 = tpu.matmul %147, %148, %cst_32 {dimension_numbers = #tpu.dot_dimension_numbers<[2], [2], [1], [1], [0, 0, 0, 1, 1, 1], [0], [0]>} : vector<1x8x16xbf16>, vector<1x8x16xbf16>, vector<1x8x8xf32> -> vector<1x8x8xf32>
    "tpu.trace_stop"() : () -> ()
    %cst_33 = arith.constant 2.500000e-01 : f32
    %150 = vector.broadcast %cst_33 : f32 to vector<1x8x8xf32>
    %151 = arith.mulf %149, %150 : vector<1x8x8xf32>
    %152 = arith.addf %151, %3 : vector<1x8x8xf32>
    %cst_34 = arith.constant dense<0xFF800000> : vector<1x8xf32>
    %153 = vector.multi_reduction <maximumf>, %152, %cst_34 [2] : vector<1x8x8xf32> to vector<1x8xf32>
    %154 = vector.shape_cast %153 : vector<1x8xf32> to vector<1x8x1xf32>
    %155 = vector.broadcast %154 : vector<1x8x1xf32> to vector<1x8x8xf32>
    %156 = arith.subf %152, %155 : vector<1x8x8xf32>
    %157 = math.exp %156 : vector<1x8x8xf32>
    %cst_35 = arith.constant dense<0.000000e+00> : vector<1x8xf32>
    %158 = vector.multi_reduction <add>, %157, %cst_35 [2] : vector<1x8x8xf32> to vector<1x8xf32>
    %159 = vector.shape_cast %158 : vector<1x8xf32> to vector<1x8x1xf32>
    %160 = tpu.reciprocal %159 {approx = true} : vector<1x8x1xf32> -> vector<1x8x1xf32>
    %161 = vector.broadcast %160 : vector<1x8x1xf32> to vector<1x8x8xf32>
    %162 = arith.mulf %157, %161 : vector<1x8x8xf32>
    %163 = arith.truncf %162 : vector<1x8x8xf32> to vector<1x8x8xbf16>
    %164 = arith.truncf %146 : vector<1x8x16xf32> to vector<1x8x16xbf16>
    "tpu.trace_start"() <{level = 10 : i32, message = "bqk,bkd->bqd"}> : () -> ()
    %cst_36 = arith.constant dense<0.000000e+00> : vector<1x8x16xf32>
    %165 = tpu.matmul %163, %164, %cst_36 {dimension_numbers = #tpu.dot_dimension_numbers<[2], [1], [1], [2], [0, 0, 0, 1, 1, 2], [0], [0]>} : vector<1x8x8xbf16>, vector<1x8x16xbf16>, vector<1x8x16xf32> -> vector<1x8x16xf32>
    "tpu.trace_stop"() : () -> ()
    %166 = vector.shape_cast %165 : vector<1x8x16xf32> to vector<8x16xf32>
    %167 = vector.extract_strided_slice %8 {offsets = [0, 96], sizes = [8, 16], strides = [1, 1]} : vector<8x128xf32> to vector<8x16xf32>
    %168 = vector.shape_cast %167 : vector<8x16xf32> to vector<1x8x16xf32>
    %169 = vector.extract_strided_slice %9 {offsets = [0, 96], sizes = [8, 16], strides = [1, 1]} : vector<8x128xf32> to vector<8x16xf32>
    %170 = vector.shape_cast %169 : vector<8x16xf32> to vector<1x8x16xf32>
    %171 = vector.extract_strided_slice %10 {offsets = [0, 96], sizes = [8, 16], strides = [1, 1]} : vector<8x128xf32> to vector<8x16xf32>
    %172 = vector.shape_cast %171 : vector<8x16xf32> to vector<1x8x16xf32>
    %173 = arith.truncf %168 : vector<1x8x16xf32> to vector<1x8x16xbf16>
    %174 = arith.truncf %170 : vector<1x8x16xf32> to vector<1x8x16xbf16>
    "tpu.trace_start"() <{level = 10 : i32, message = "bqd,bkd->bqk"}> : () -> ()
    %cst_37 = arith.constant dense<0.000000e+00> : vector<1x8x8xf32>
    %175 = tpu.matmul %173, %174, %cst_37 {dimension_numbers = #tpu.dot_dimension_numbers<[2], [2], [1], [1], [0, 0, 0, 1, 1, 1], [0], [0]>} : vector<1x8x16xbf16>, vector<1x8x16xbf16>, vector<1x8x8xf32> -> vector<1x8x8xf32>
    "tpu.trace_stop"() : () -> ()
    %cst_38 = arith.constant 2.500000e-01 : f32
    %176 = vector.broadcast %cst_38 : f32 to vector<1x8x8xf32>
    %177 = arith.mulf %175, %176 : vector<1x8x8xf32>
    %178 = arith.addf %177, %3 : vector<1x8x8xf32>
    %cst_39 = arith.constant dense<0xFF800000> : vector<1x8xf32>
    %179 = vector.multi_reduction <maximumf>, %178, %cst_39 [2] : vector<1x8x8xf32> to vector<1x8xf32>
    %180 = vector.shape_cast %179 : vector<1x8xf32> to vector<1x8x1xf32>
    %181 = vector.broadcast %180 : vector<1x8x1xf32> to vector<1x8x8xf32>
    %182 = arith.subf %178, %181 : vector<1x8x8xf32>
    %183 = math.exp %182 : vector<1x8x8xf32>
    %cst_40 = arith.constant dense<0.000000e+00> : vector<1x8xf32>
    %184 = vector.multi_reduction <add>, %183, %cst_40 [2] : vector<1x8x8xf32> to vector<1x8xf32>
    %185 = vector.shape_cast %184 : vector<1x8xf32> to vector<1x8x1xf32>
    %186 = tpu.reciprocal %185 {approx = true} : vector<1x8x1xf32> -> vector<1x8x1xf32>
    %187 = vector.broadcast %186 : vector<1x8x1xf32> to vector<1x8x8xf32>
    %188 = arith.mulf %183, %187 : vector<1x8x8xf32>
    %189 = arith.truncf %188 : vector<1x8x8xf32> to vector<1x8x8xbf16>
    %190 = arith.truncf %172 : vector<1x8x16xf32> to vector<1x8x16xbf16>
    "tpu.trace_start"() <{level = 10 : i32, message = "bqk,bkd->bqd"}> : () -> ()
    %cst_41 = arith.constant dense<0.000000e+00> : vector<1x8x16xf32>
    %191 = tpu.matmul %189, %190, %cst_41 {dimension_numbers = #tpu.dot_dimension_numbers<[2], [1], [1], [2], [0, 0, 0, 1, 1, 2], [0], [0]>} : vector<1x8x8xbf16>, vector<1x8x16xbf16>, vector<1x8x16xf32> -> vector<1x8x16xf32>
    "tpu.trace_stop"() : () -> ()
    %192 = vector.shape_cast %191 : vector<1x8x16xf32> to vector<8x16xf32>
    %193 = vector.extract_strided_slice %8 {offsets = [0, 112], sizes = [8, 16], strides = [1, 1]} : vector<8x128xf32> to vector<8x16xf32>
    %194 = vector.shape_cast %193 : vector<8x16xf32> to vector<1x8x16xf32>
    %195 = vector.extract_strided_slice %9 {offsets = [0, 112], sizes = [8, 16], strides = [1, 1]} : vector<8x128xf32> to vector<8x16xf32>
    %196 = vector.shape_cast %195 : vector<8x16xf32> to vector<1x8x16xf32>
    %197 = vector.extract_strided_slice %10 {offsets = [0, 112], sizes = [8, 16], strides = [1, 1]} : vector<8x128xf32> to vector<8x16xf32>
    %198 = vector.shape_cast %197 : vector<8x16xf32> to vector<1x8x16xf32>
    %199 = arith.truncf %194 : vector<1x8x16xf32> to vector<1x8x16xbf16>
    %200 = arith.truncf %196 : vector<1x8x16xf32> to vector<1x8x16xbf16>
    "tpu.trace_start"() <{level = 10 : i32, message = "bqd,bkd->bqk"}> : () -> ()
    %cst_42 = arith.constant dense<0.000000e+00> : vector<1x8x8xf32>
    %201 = tpu.matmul %199, %200, %cst_42 {dimension_numbers = #tpu.dot_dimension_numbers<[2], [2], [1], [1], [0, 0, 0, 1, 1, 1], [0], [0]>} : vector<1x8x16xbf16>, vector<1x8x16xbf16>, vector<1x8x8xf32> -> vector<1x8x8xf32>
    "tpu.trace_stop"() : () -> ()
    %cst_43 = arith.constant 2.500000e-01 : f32
    %202 = vector.broadcast %cst_43 : f32 to vector<1x8x8xf32>
    %203 = arith.mulf %201, %202 : vector<1x8x8xf32>
    %204 = arith.addf %203, %3 : vector<1x8x8xf32>
    %cst_44 = arith.constant dense<0xFF800000> : vector<1x8xf32>
    %205 = vector.multi_reduction <maximumf>, %204, %cst_44 [2] : vector<1x8x8xf32> to vector<1x8xf32>
    %206 = vector.shape_cast %205 : vector<1x8xf32> to vector<1x8x1xf32>
    %207 = vector.broadcast %206 : vector<1x8x1xf32> to vector<1x8x8xf32>
    %208 = arith.subf %204, %207 : vector<1x8x8xf32>
    %209 = math.exp %208 : vector<1x8x8xf32>
    %cst_45 = arith.constant dense<0.000000e+00> : vector<1x8xf32>
    %210 = vector.multi_reduction <add>, %209, %cst_45 [2] : vector<1x8x8xf32> to vector<1x8xf32>
    %211 = vector.shape_cast %210 : vector<1x8xf32> to vector<1x8x1xf32>
    %212 = tpu.reciprocal %211 {approx = true} : vector<1x8x1xf32> -> vector<1x8x1xf32>
    %213 = vector.broadcast %212 : vector<1x8x1xf32> to vector<1x8x8xf32>
    %214 = arith.mulf %209, %213 : vector<1x8x8xf32>
    %215 = arith.truncf %214 : vector<1x8x8xf32> to vector<1x8x8xbf16>
    %216 = arith.truncf %198 : vector<1x8x16xf32> to vector<1x8x16xbf16>
    "tpu.trace_start"() <{level = 10 : i32, message = "bqk,bkd->bqd"}> : () -> ()
    %cst_46 = arith.constant dense<0.000000e+00> : vector<1x8x16xf32>
    %217 = tpu.matmul %215, %216, %cst_46 {dimension_numbers = #tpu.dot_dimension_numbers<[2], [1], [1], [2], [0, 0, 0, 1, 1, 2], [0], [0]>} : vector<1x8x8xbf16>, vector<1x8x16xbf16>, vector<1x8x16xf32> -> vector<1x8x16xf32>
    "tpu.trace_stop"() : () -> ()
    %218 = vector.shape_cast %217 : vector<1x8x16xf32> to vector<8x16xf32>
    %219 = vector.shape_cast %32 : vector<1x8x8xf32> to vector<1x1x8x8xf32>
    %220 = vector.shape_cast %58 : vector<1x8x8xf32> to vector<1x1x8x8xf32>
    %221 = vector.shape_cast %84 : vector<1x8x8xf32> to vector<1x1x8x8xf32>
    %222 = vector.shape_cast %110 : vector<1x8x8xf32> to vector<1x1x8x8xf32>
    %223 = vector.shape_cast %136 : vector<1x8x8xf32> to vector<1x1x8x8xf32>
    %224 = vector.shape_cast %162 : vector<1x8x8xf32> to vector<1x1x8x8xf32>
    %225 = vector.shape_cast %188 : vector<1x8x8xf32> to vector<1x1x8x8xf32>
    %226 = vector.shape_cast %214 : vector<1x8x8xf32> to vector<1x1x8x8xf32>
    %227 = tpu.concatenate %219, %220, %221, %222, %223, %224, %225, %226 in 1 : vector<1x1x8x8xf32>, vector<1x1x8x8xf32>, vector<1x1x8x8xf32>, vector<1x1x8x8xf32>, vector<1x1x8x8xf32>, vector<1x1x8x8xf32>, vector<1x1x8x8xf32>, vector<1x1x8x8xf32> -> vector<1x8x8x8xf32>
    %228 = arith.truncf %227 : vector<1x8x8x8xf32> to vector<1x8x8x8xbf16>
    %c0_47 = arith.constant 0 : index
    %c0_48 = arith.constant 0 : index
    %c0_49 = arith.constant 0 : index
    %c0_50 = arith.constant 0 : index
    %229 = vector.load %arg12[%c0_47, %c0_48, %c0_49, %c0_50] : memref<1x8x8x8xbf16, #tpu.memory_space<vmem>>, vector<1x8x8x8xbf16>
    tpu.vector_store %arg12[%c0_47, %c0_48, %c0_49, %c0_50], %228 {strides = array<i32>} : memref<1x8x8x8xbf16, #tpu.memory_space<vmem>>, vector<1x8x8x8xbf16>,
    %230 = tpu.concatenate %36, %62, %88, %114, %140, %166, %192, %218 in 1 : vector<8x16xf32>, vector<8x16xf32>, vector<8x16xf32>, vector<8x16xf32>, vector<8x16xf32>, vector<8x16xf32>, vector<8x16xf32>, vector<8x16xf32> -> vector<8x128xf32>
    %231 = arith.truncf %230 : vector<8x128xf32> to vector<8x128xbf16>
    %c0_51 = arith.constant 0 : index
    %c0_52 = arith.constant 0 : index
    %232 = vector.load %arg4[%c0_51, %c0_52] : memref<128x128xf32, #tpu.memory_space<vmem>>, vector<128x128xf32>
    %233 = arith.truncf %232 : vector<128x128xf32> to vector<128x128xbf16>
    %cst_53 = arith.constant dense<0.000000e+00> : vector<8x128xf32>
    %234 = tpu.matmul %231, %233, %cst_53 {dimension_numbers = #tpu.dot_dimension_numbers<[1], [0], [0], [1], [0, 0, 1, 1], [], []>} : vector<8x128xbf16>, vector<128x128xbf16>, vector<8x128xf32> -> vector<8x128xf32>
    %235 = arith.addf %234, %1 : vector<8x128xf32>
    %c0_54 = arith.constant 0 : index
    %c0_55 = arith.constant 0 : index
    %236 = vector.load %arg5[%c0_54, %c0_55] : memref<1x128xf32, #tpu.memory_space<vmem>>, vector<1x128xf32>
    %c0_56 = arith.constant 0 : index
    %c0_57 = arith.constant 0 : index
    %237 = vector.load %arg6[%c0_56, %c0_57] : memref<1x128xf32, #tpu.memory_space<vmem>>, vector<1x128xf32>
    %cst_58 = arith.constant dense<0.000000e+00> : vector<8xf32>
    %238 = vector.multi_reduction <add>, %235, %cst_58 [1] : vector<8x128xf32> to vector<8xf32>
    %239 = vector.shape_cast %238 : vector<8xf32> to vector<8x1xf32>
    %cst_59 = arith.constant 1.280000e+02 : f32
    %240 = vector.broadcast %cst_59 : f32 to vector<8x1xf32>
    %241 = arith.divf %239, %240 : vector<8x1xf32>
    %242 = vector.broadcast %241 : vector<8x1xf32> to vector<8x128xf32>
    %243 = arith.subf %235, %242 : vector<8x128xf32>
    %244 = arith.mulf %243, %243 : vector<8x128xf32>
    %cst_60 = arith.constant dense<0.000000e+00> : vector<8xf32>
    %245 = vector.multi_reduction <add>, %244, %cst_60 [1] : vector<8x128xf32> to vector<8xf32>
    %246 = vector.shape_cast %245 : vector<8xf32> to vector<8x1xf32>
    %cst_61 = arith.constant 1.280000e+02 : f32
    %247 = vector.broadcast %cst_61 : f32 to vector<8x1xf32>
    %248 = arith.divf %246, %247 : vector<8x1xf32>
    %249 = vector.broadcast %241 : vector<8x1xf32> to vector<8x128xf32>
    %250 = arith.subf %235, %249 : vector<8x128xf32>
    %cst_62 = arith.constant 9.99999974E-6 : f32
    %251 = vector.broadcast %cst_62 : f32 to vector<8x1xf32>
    %252 = arith.addf %248, %251 : vector<8x1xf32>
    %253 = math.rsqrt %252 : vector<8x1xf32>
    %254 = vector.broadcast %253 : vector<8x1xf32> to vector<8x128xf32>
    %255 = arith.mulf %250, %254 : vector<8x128xf32>
    %256 = vector.broadcast %236 : vector<1x128xf32> to vector<8x128xf32>
    %257 = arith.mulf %255, %256 : vector<8x128xf32>
    %258 = vector.broadcast %237 : vector<1x128xf32> to vector<8x128xf32>
    %259 = arith.addf %257, %258 : vector<8x128xf32>
    %260 = arith.truncf %259 : vector<8x128xf32> to vector<8x128xbf16>
    %c0_63 = arith.constant 0 : index
    %c0_64 = arith.constant 0 : index
    %261 = vector.load %arg7[%c0_63, %c0_64] : memref<128x512xf32, #tpu.memory_space<vmem>>, vector<128x512xf32>
    %262 = arith.truncf %261 : vector<128x512xf32> to vector<128x512xbf16>
    %cst_65 = arith.constant dense<0.000000e+00> : vector<8x512xf32>
    %263 = tpu.matmul %260, %262, %cst_65 {dimension_numbers = #tpu.dot_dimension_numbers<[1], [0], [0], [1], [0, 0, 1, 1], [], []>} : vector<8x128xbf16>, vector<128x512xbf16>, vector<8x512xf32> -> vector<8x512xf32>
    %cst_66 = arith.constant 0.000000e+00 : f32
    %264 = vector.broadcast %cst_66 : f32 to vector<8x512xf32>
    %265 = arith.maximumf %263, %264 : vector<8x512xf32>
    %266 = arith.truncf %265 : vector<8x512xf32> to vector<8x512xbf16>
    %c0_67 = arith.constant 0 : index
    %c0_68 = arith.constant 0 : index
    %267 = vector.load %arg8[%c0_67, %c0_68] : memref<512x128xf32, #tpu.memory_space<vmem>>, vector<512x128xf32>
    %268 = arith.truncf %267 : vector<512x128xf32> to vector<512x128xbf16>
    %cst_69 = arith.constant dense<0.000000e+00> : vector<8x128xf32>
    %269 = tpu.matmul %266, %268, %cst_69 {dimension_numbers = #tpu.dot_dimension_numbers<[1], [0], [0], [1], [0, 0, 1, 1], [], []>} : vector<8x512xbf16>, vector<512x128xbf16>, vector<8x128xf32> -> vector<8x128xf32>
    %270 = arith.addf %269, %259 : vector<8x128xf32>
    %c0_70 = arith.constant 0 : index
    %c0_71 = arith.constant 0 : index
    %271 = vector.load %arg9[%c0_70, %c0_71] : memref<1x128xf32, #tpu.memory_space<vmem>>, vector<1x128xf32>
    %c0_72 = arith.constant 0 : index
    %c0_73 = arith.constant 0 : index
    %272 = vector.load %arg10[%c0_72, %c0_73] : memref<1x128xf32, #tpu.memory_space<vmem>>, vector<1x128xf32>
    %cst_74 = arith.constant dense<0.000000e+00> : vector<8xf32>
    %273 = vector.multi_reduction <add>, %270, %cst_74 [1] : vector<8x128xf32> to vector<8xf32>
    %274 = vector.shape_cast %273 : vector<8xf32> to vector<8x1xf32>
    %cst_75 = arith.constant 1.280000e+02 : f32
    %275 = vector.broadcast %cst_75 : f32 to vector<8x1xf32>
    %276 = arith.divf %274, %275 : vector<8x1xf32>
    %277 = vector.broadcast %276 : vector<8x1xf32> to vector<8x128xf32>
    %278 = arith.subf %270, %277 : vector<8x128xf32>
    %279 = arith.mulf %278, %278 : vector<8x128xf32>
    %cst_76 = arith.constant dense<0.000000e+00> : vector<8xf32>
    %280 = vector.multi_reduction <add>, %279, %cst_76 [1] : vector<8x128xf32> to vector<8xf32>
    %281 = vector.shape_cast %280 : vector<8xf32> to vector<8x1xf32>
    %cst_77 = arith.constant 1.280000e+02 : f32
    %282 = vector.broadcast %cst_77 : f32 to vector<8x1xf32>
    %283 = arith.divf %281, %282 : vector<8x1xf32>
    %284 = vector.broadcast %276 : vector<8x1xf32> to vector<8x128xf32>
    %285 = arith.subf %270, %284 : vector<8x128xf32>
    %cst_78 = arith.constant 9.99999974E-6 : f32
    %286 = vector.broadcast %cst_78 : f32 to vector<8x1xf32>
    %287 = arith.addf %283, %286 : vector<8x1xf32>
    %288 = math.rsqrt %287 : vector<8x1xf32>
    %289 = vector.broadcast %288 : vector<8x1xf32> to vector<8x128xf32>
    %290 = arith.mulf %285, %289 : vector<8x128xf32>
    %291 = vector.broadcast %271 : vector<1x128xf32> to vector<8x128xf32>
    %292 = arith.mulf %290, %291 : vector<8x128xf32>
    %293 = vector.broadcast %272 : vector<1x128xf32> to vector<8x128xf32>
    %294 = arith.addf %292, %293 : vector<8x128xf32>
    %295 = vector.shape_cast %294 : vector<8x128xf32> to vector<1x8x128xf32>
    %c0_79 = arith.constant 0 : index
    %c0_80 = arith.constant 0 : index
    %c0_81 = arith.constant 0 : index
    %296 = vector.load %arg11[%c0_79, %c0_80, %c0_81] : memref<1x8x128xf32, #tpu.memory_space<vmem>>, vector<1x8x128xf32>
    tpu.vector_store %arg11[%c0_79, %c0_80, %c0_81], %295 {strides = array<i32>} : memref<1x8x128xf32, #tpu.memory_space<vmem>>, vector<1x8x128xf32>,
    return
  }
  func.func @transform_0(%arg0: i32) -> (i32, i32, i32) {
    %c0_i32 = arith.constant 0 : i32
    %c0_i32_0 = arith.constant 0 : i32
    %c0_i32_1 = arith.constant 0 : i32
    return %arg0, %c0_i32, %c0_i32_0 : i32, i32, i32
  }
  func.func @transform_1(%arg0: i32) -> (i32, i32, i32) {
    %c0_i32 = arith.constant 0 : i32
    %c0_i32_0 = arith.constant 0 : i32
    %c0_i32_1 = arith.constant 0 : i32
    return %arg0, %c0_i32, %c0_i32_0 : i32, i32, i32
  }
  func.func @transform_2(%arg0: i32) -> (i32, i32) {
    %c0_i32 = arith.constant 0 : i32
    %c0_i32_0 = arith.constant 0 : i32
    %c0_i32_1 = arith.constant 0 : i32
    return %c0_i32, %c0_i32_0 : i32, i32
  }
  func.func @transform_3(%arg0: i32) -> (i32, i32) {
    %c0_i32 = arith.constant 0 : i32
    %c0_i32_0 = arith.constant 0 : i32
    %c0_i32_1 = arith.constant 0 : i32
    return %c0_i32, %c0_i32_0 : i32, i32
  }
  func.func @transform_4(%arg0: i32) -> (i32, i32) {
    %c0_i32 = arith.constant 0 : i32
    %c0_i32_0 = arith.constant 0 : i32
    %c0_i32_1 = arith.constant 0 : i32
    return %c0_i32, %c0_i32_0 : i32, i32
  }
  func.func @transform_5(%arg0: i32) -> (i32, i32) {
    %c0_i32 = arith.constant 0 : i32
    %c0_i32_0 = arith.constant 0 : i32
    %c0_i32_1 = arith.constant 0 : i32
    return %c0_i32, %c0_i32_0 : i32, i32
  }
  func.func @transform_6(%arg0: i32) -> (i32, i32) {
    %c0_i32 = arith.constant 0 : i32
    %c0_i32_0 = arith.constant 0 : i32
    %c0_i32_1 = arith.constant 0 : i32
    return %c0_i32, %c0_i32_0 : i32, i32
  }
  func.func @transform_7(%arg0: i32) -> (i32, i32) {
    %c0_i32 = arith.constant 0 : i32
    %c0_i32_0 = arith.constant 0 : i32
    %c0_i32_1 = arith.constant 0 : i32
    return %c0_i32, %c0_i32_0 : i32, i32
  }
  func.func @transform_8(%arg0: i32) -> (i32, i32) {
    %c0_i32 = arith.constant 0 : i32
    %c0_i32_0 = arith.constant 0 : i32
    %c0_i32_1 = arith.constant 0 : i32
    return %c0_i32, %c0_i32_0 : i32, i32
  }
  func.func @transform_9(%arg0: i32) -> (i32, i32) {
    %c0_i32 = arith.constant 0 : i32
    %c0_i32_0 = arith.constant 0 : i32
    %c0_i32_1 = arith.constant 0 : i32
    return %c0_i32, %c0_i32_0 : i32, i32
  }
  func.func @transform_10(%arg0: i32) -> (i32, i32, i32) {
    %c0_i32 = arith.constant 0 : i32
    %c0_i32_0 = arith.constant 0 : i32
    %c0_i32_1 = arith.constant 0 : i32
    return %arg0, %c0_i32, %c0_i32_0 : i32, i32, i32
  }
  func.func @transform_11(%arg0: i32) -> (i32, i32, i32, i32) {
    %c0_i32 = arith.constant 0 : i32
    %c0_i32_0 = arith.constant 0 : i32
    %c0_i32_1 = arith.constant 0 : i32
    %c0_i32_2 = arith.constant 0 : i32
    return %arg0, %c0_i32, %c0_i32_0, %c0_i32_1 : i32, i32, i32, i32
  }
}

</mosaic_0001>

<bundles_post_ra>
// kernel: tpu_custom_call.1
= control target key start
LH: loop header
LB: loop body
LE: loop exit
PB: predicated region body
PF: predicated region fallthrough
CT: control target
= control target key end

     0   :  { %s4031_s0 = inlined_call_operand.hbm [shape: f32[2,8,128], index: 0, kind: input, shape index: {}]   ;;  %s4032_s1 = inlined_call_operand.hbm [shape: bf16[2,8,8], index: 1, kind: input, shape index: {}]   ;;  %s4033_s2 = inlined_call_operand.hbm [shape: f32[128,384], index: 2, kind: input, shape index: {}]   ;;  %s4034_s3 = inlined_call_operand.hbm [shape: f32[128,128], index: 3, kind: input, shape index: {}]   ;;  %s4035_s4 = inlined_call_operand.hbm [shape: f32[1,128], index: 4, kind: input, shape index: {}]   ;;  %s4036_s5 = inlined_call_operand.hbm [shape: f32[1,128], index: 5, kind: input, shape index: {}]   ;;  %s4037_s6 = inlined_call_operand.hbm [shape: f32[128,512], index: 6, kind: input, shape index: {}]   ;;  %s4038_s7 = inlined_call_operand.hbm [shape: f32[512,128], index: 7, kind: input, shape index: {}]   ;;  %s4039_s8 = inlined_call_operand.hbm [shape: f32[1,128], index: 8, kind: input, shape index: {}]   ;;  %s4040_s9 = inlined_call_operand.hbm [shape: f32[1,128], index: 9, kind: input, shape index: {}]   ;;  %s4041_s10 = inlined_call_operand.hbm [shape: f32[2,8,128], index: 10, kind: output, shape index: {0}]   ;;  %s4042_s11 = inlined_call_operand.hbm [shape: bf16[2,8,8,8], index: 11, kind: output, shape index: {1}]  }
   0x1   :  { %4051 = sst [smem:[#allocation32_spill]] %s4031_s0 }
   0x2   :  { %4052 = sst [smem:[#allocation33_spill]] %s4033_s2 }
   0x3   :  { %4053 = sst [smem:[#allocation34_spill]] %s4034_s3 }
   0x4   :  { %4054 = sst [smem:[#allocation35_spill]] %s4035_s4 }
   0x5   :  { %4055 = sst [smem:[#allocation36_spill]] %s4041_s10 }
   0x6   :  { %4056 = sst [smem:[#allocation37_spill]] %s4042_s11 }
   0x7   :  { %17 = vsyncpa [#allocation3], 0 }
   0x8   :  { %19 = vsyncpa [#allocation3 + $0x1], 0 }
   0x9   :  { %20 = vsyncpa [#allocation6], 0 }
   0xa   :  { %22 = vsyncpa [#allocation6 + $0x1], 0 }
   0xb   :  { %23 = vsyncpa [#allocation9], 0 }
   0xc   :  { %24 = vsyncpa [#allocation12], 0 }
   0xd   :  { %25 = vsyncpa [#allocation15], 0 }
   0xe   :  { %26 = vsyncpa [#allocation18], 0 }
   0xf   :  { %27 = vsyncpa [#allocation4], 0 }
  0x10   :  { %29 = vsyncpa [#allocation4 + $0x1], 0 }
  0x11   :  { %30 = vsyncpa [#allocation21], 0 }
  0x12   :  { %32 = vsyncpa [#allocation21 + $0x1], 0  ;;  %s3358_s17 = smov 0   ;;  %s3360_s18 = smov 0  }
  0x13   :  { %s3362_s19 = smov 0   ;;  %s3364_s20 = smov 0  }
  0x14 LB: > { %s3269_s21 = smov [#allocation7]   ;;  %s3379_s23 = sadd.s32 4294967295, %s3267_s20   ;;  %s3267_s20 = sphi %s3364_s20, %s4094_s20   ;;  %s3263_s19 = sphi %s3362_s19, %s4093_s19   ;;  %s3259_s18 = sphi %s3360_s18, %s4092_s18   ;;  %s3255_s17 = sphi %s3358_s17, %s4091_s17  }
  0x15   : > { %s327_s22 = sshll.u32 %s3269_s21, 4  ;;  %p2386_p0 = scmp.ge.s32.totalorder %s3267_s20, 1  ;;  %s3384_s22 = int_to_ptr.vmem [resolvable:$true] %s327_s22 }
  0x16   : > { %p4046_p1 = scmp.eq.s32.totalorder %s3379_s23, 0  ;;  %p315_p2 = scmp.lt.s32.totalorder %s3267_s20, 3 }
  0x17   : > { %s3270_s25 = smov [#allocation8]   ;;  %s3271_s28 = smov [#allocation11]  }
  0x18   : > { %p3386_p3 = pnand %p2386_p0, %p315_p2  ;;  %s340_s26 = sshll.u32 %s3270_s25, 4  ;;  %s3399_s26 = int_to_ptr.vmem [resolvable:$true] %s340_s26 }
  0x19   : > { %s3401_s29 = sshll.u32 %s3271_s28, 4  ;;  %s4060_s2 = sld [smem:[#allocation33_spill]]  ;;  %s366_s29 = int_to_ptr.vmem [resolvable:$true] %s3401_s29 }
  0x1a   : > { %s4057_s24 = scalar_select %p3386_p3, 1, 0 }
  0x1b   : > { %p2711_p5 = pneg %p3386_p3 }
  0x1c   : > { %4058 = sst [smem:[#allocation31_spill]] %s4057_s24 }
  0x1d   : > { %p3395_p6 = pnand %p2711_p5, %p4046_p1 }
  0x1f   : > { %s2861_s13 = scalar_lea.hbm %s4060_s2, 6144  ;;  %p3411_p8 = pneg %p3395_p6 }
  0x20   : > { %p2862_p7 = scmp.ne.s32.totalorder %s4060_s2, %s2861_s13  ;;  %p2868_p11 = scmp.lt.u32.totalorder %s2861_s13, %s4060_s2 }
  0x22   : > { %p2864_p9 = pnand %p3411_p8, %p2862_p7 }
  0x24   : > { %p2865_p10 = pneg %p2864_p9 }
  0x26   : > { %p2870_p12 = pnand %p2868_p11, %p2865_p10 }
  0x28   : > { %2873 = shalt.err (!%p2870_p12)
}
  0x29   : > { %s2874_s28 = scalar_lea.vmem %s3384_s22, 6144  ;;  %p2882_p5 = scmp.lt.s32.totalorder %s3384_s22, %s3384_s22 }
  0x2a   : > { %p2875_p13 = scmp.ne.s32.totalorder %s3384_s22, %s2874_s28  ;;  %p2883_p4 = scmp.lt.s32.totalorder %s2874_s28, %s2874_s28 }
  0x2c   : > { %p2877_p0 = pnand %p2875_p13, %p3411_p8  ;;  %p2884_p7 = por %p2883_p4, %p2882_p5 }
  0x2e   : > { %p2878_p2 = pneg %p2877_p0 }
  0x30   : > { %p2885_p9 = pnand %p2884_p7, %p2878_p2 }
  0x32   : > { %2888 = shalt.err (!%p2885_p9)
}
  0x33   : > { %s3272_s30 = smov 384   ;;  %s3273_s12 = smov 24  }
  0x34   : > { %2714 = dma.hbm_to_vmem [thread:$0]  (!%p3395_p6), %s4060_s2, 6144, %s3384_s22, [#allocation6], %s3272_s30, %s3272_s30, %s3273_s12  }
  0x35   : > { %s4062_s3 = sld [smem:[#allocation34_spill]] }
  0x3b   : > { %s2889_s25 = scalar_lea.hbm %s4062_s3, 2048 }
  0x3c   : > { %p2890_p4 = scmp.ne.s32.totalorder %s4062_s3, %s2889_s25  ;;  %p2896_p12 = scmp.lt.u32.totalorder %s2889_s25, %s4062_s3 }
  0x3e   : > { %p2892_p10 = pnand %p2890_p4, %p3411_p8 }
  0x40   : > { %p2893_p11 = pneg %p2892_p10 }
  0x42   : > { %p2898_p13 = pnand %p2896_p12, %p2893_p11 }
  0x44   : > { %2901 = shalt.err (!%p2898_p13)
}
  0x45   : > { %s2902_s22 = scalar_lea.vmem %s3399_s26, 2048  ;;  %p2910_p7 = scmp.lt.s32.totalorder %s3399_s26, %s3399_s26 }
  0x46   : > { %p2903_p0 = scmp.ne.s32.totalorder %s3399_s26, %s2902_s22  ;;  %p2911_p9 = scmp.lt.s32.totalorder %s2902_s22, %s2902_s22 }
  0x48   : > { %p2905_p2 = pnand %p2903_p0, %p3411_p8  ;;  %p2912_p4 = por %p2911_p9, %p2910_p7 }
  0x4a   : > { %p2906_p5 = pneg %p2905_p2 }
  0x4c   : > { %p2913_p10 = pnand %p2912_p4, %p2906_p5 }
  0x4e   : > { %2916 = shalt.err (!%p2913_p10)
}
  0x4f   : > { %s4048_s10 = smov 128   ;;  %s3275_s11 = smov 8  }
  0x50   : > { %2717 = dma.hbm_to_vmem [thread:$0]  (!%p3395_p6), %s4062_s3, 2048, %s3399_s26, [#allocation9], %s4048_s10, %s4048_s10, %s3275_s11  }
  0x51   : > { %s2917_s14 = scalar_lea.hbm %s4036_s5, 16 }
  0x52   : > { %p2918_p11 = scmp.ne.s32.totalorder %s4036_s5, %s2917_s14  ;;  %p2924_p0 = scmp.lt.u32.totalorder %s2917_s14, %s4036_s5 }
  0x54   : > { %p2920_p12 = pnand %p2918_p11, %p3411_p8 }
  0x56   : > { %p2921_p13 = pneg %p2920_p12 }
  0x58   : > { %p2926_p2 = pnand %p2924_p0, %p2921_p13 }
  0x5a   : > { %2929 = shalt.err (!%p2926_p2)
}
  0x5b   : > { %s2930_s22 = scalar_lea.vmem %s366_s29, 16  ;;  %s2937_s26 = scalar_lea.vmem %s366_s29, 32 }
  0x5c   : > { %p2931_p5 = scmp.ne.s32.totalorder %s366_s29, %s2930_s22  ;;  %p2938_p4 = scmp.lt.s32.totalorder %s366_s29, %s366_s29 }
  0x5d   : > { %p2939_p10 = scmp.lt.s32.totalorder %s2937_s26, %s2930_s22 }
  0x5e   : > { %p2933_p7 = pnand %p2931_p5, %p3411_p8 }
  0x5f   : > { %p2940_p1 = por %p2939_p10, %p2938_p4 }
  0x60   : > { %p2934_p9 = pneg %p2933_p7 }
  0x62   : > { %p2941_p3 = pnand %p2940_p1, %p2934_p9 }
  0x64   : > { %2944 = shalt.err (!%p2941_p3)
}
  0x65   : > { %2723 = dma.hbm_to_vmem [thread:$0]  (!%p3395_p6), %s4036_s5, 16, %s366_s29, [#allocation12]  }
  0x66   : > { %s3276_s12 = smov [#allocation14]   ;;  %s3277_s14 = smov [#allocation10]  }
  0x67   : > { %s388_s13 = sshll.u32 %s3276_s12, 4  ;;  %s354_s15 = sshll.u32 %s3277_s14, 4  ;;  %s389_s13 = int_to_ptr.vmem [resolvable:$true] %s388_s13  ;;  %s355_s15 = int_to_ptr.vmem [resolvable:$true] %s354_s15 }
  0x68   : > { %s2945_s28 = scalar_lea.hbm %s4038_s7, 8192 }
  0x69   : > { %p2946_p1 = scmp.ne.s32.totalorder %s4038_s7, %s2945_s28  ;;  %p2952_p12 = scmp.lt.u32.totalorder %s2945_s28, %s4038_s7 }
  0x6b   : > { %p2948_p3 = pnand %p2946_p1, %p3411_p8 }
  0x6d   : > { %p2949_p11 = pneg %p2948_p3 }
  0x6f   : > { %p2954_p13 = pnand %p2952_p12, %p2949_p11 }
  0x71   : > { %2957 = shalt.err (!%p2954_p13)
}
  0x72   : > { %s2958_s29 = scalar_lea.vmem %s389_s13, 8192  ;;  %p2966_p7 = scmp.lt.s32.totalorder %s389_s13, %s389_s13 }
  0x73   : > { %p2959_p0 = scmp.ne.s32.totalorder %s389_s13, %s2958_s29  ;;  %p2967_p9 = scmp.lt.s32.totalorder %s2958_s29, %s2958_s29 }
  0x75   : > { %p2961_p2 = pnand %p2959_p0, %p3411_p8  ;;  %p2968_p4 = por %p2967_p9, %p2966_p7 }
  0x77   : > { %p2962_p5 = pneg %p2961_p2 }
  0x79   : > { %p2969_p10 = pnand %p2968_p4, %p2962_p5 }
  0x7b   : > { %2972 = shalt.err (!%p2969_p10)
}
  0x7c   : > { %s4063_s30 = smov 128   ;;  %s4064_s4 = sld [smem:[#allocation35_spill]] }
  0x7d   : > { %2729 = dma.hbm_to_vmem [thread:$0]  (!%p3395_p6), %s4038_s7, 8192, %s389_s13, [#allocation15], %s4063_s30, %s4063_s30, %s3275_s11  }
  0x82   : > { %s2973_s25 = scalar_lea.hbm %s4064_s4, 16 }
  0x83   : > { %p2974_p1 = scmp.ne.s32.totalorder %s4064_s4, %s2973_s25  ;;  %p2980_p12 = scmp.lt.u32.totalorder %s2973_s25, %s4064_s4 }
  0x85   : > { %p2976_p3 = pnand %p2974_p1, %p3411_p8 }
  0x87   : > { %p2977_p11 = pneg %p2976_p3 }
  0x89   : > { %p2982_p13 = pnand %p2980_p12, %p2977_p11 }
  0x8b   : > { %2985 = shalt.err (!%p2982_p13)
}
  0x8c   : > { %s2986_s29 = scalar_lea.vmem %s355_s15, 16  ;;  %s2993_s11 = scalar_lea.vmem %s355_s15, 32 }
  0x8d   : > { %p2987_p0 = scmp.ne.s32.totalorder %s355_s15, %s2986_s29  ;;  %p2994_p7 = scmp.lt.s32.totalorder %s355_s15, %s355_s15 }
  0x8e   : > { %p2995_p9 = scmp.lt.s32.totalorder %s2993_s11, %s2986_s29 }
  0x8f   : > { %p2989_p2 = pnand %p2987_p0, %p3411_p8 }
  0x90   : > { %p2996_p4 = por %p2995_p9, %p2994_p7 }
  0x91   : > { %p2990_p5 = pneg %p2989_p2 }
  0x93   : > { %p2997_p10 = pnand %p2996_p4, %p2990_p5 }
  0x95   : > { %3000 = shalt.err (!%p2997_p10)
}
  0x96   : > { %2720 = dma.hbm_to_vmem [thread:$0]  (!%p3395_p6), %s4064_s4, 16, %s355_s15, [#allocation9]  }
  0x97   : > { %s3278_s10 = smov [#allocation13]   ;;  %s3001_s25 = scalar_lea.hbm %s4037_s6, 8192 }
  0x98   : > { %s375_s12 = sshll.u32 %s3278_s10, 4  ;;  %p3002_p1 = scmp.ne.s32.totalorder %s4037_s6, %s3001_s25  ;;  %s376_s12 = int_to_ptr.vmem [resolvable:$true] %s375_s12 }
  0x99   : > { %p3008_p12 = scmp.lt.u32.totalorder %s3001_s25, %s4037_s6 }
  0x9a   : > { %p3004_p3 = pnand %p3002_p1, %p3411_p8 }
  0x9c   : > { %p3005_p11 = pneg %p3004_p3 }
  0x9e   : > { %p3010_p13 = pnand %p3008_p12, %p3005_p11 }
  0xa0   : > { %3013 = shalt.err (!%p3010_p13)
}
  0xa1   : > { %s3014_s15 = scalar_lea.vmem %s376_s12, 8192  ;;  %p3022_p7 = scmp.lt.s32.totalorder %s376_s12, %s376_s12 }
  0xa2   : > { %p3015_p0 = scmp.ne.s32.totalorder %s376_s12, %s3014_s15  ;;  %p3023_p9 = scmp.lt.s32.totalorder %s3014_s15, %s3014_s15 }
  0xa4   : > { %p3017_p2 = pnand %p3015_p0, %p3411_p8  ;;  %p3024_p4 = por %p3023_p9, %p3022_p7 }
  0xa6   : > { %p3018_p5 = pneg %p3017_p2 }
  0xa8   : > { %p3025_p10 = pnand %p3024_p4, %p3018_p5 }
  0xaa   : > { %3028 = shalt.err (!%p3025_p10)
}
  0xab   : > { %s3279_s29 = smov 512   ;;  %s3280_s11 = smov 32  }
  0xac   : > { %2726 = dma.hbm_to_vmem [thread:$0]  (!%p3395_p6), %s4037_s6, 8192, %s376_s12, [#allocation12], %s3279_s29, %s3279_s29, %s3280_s11  }
  0xad   : > { %s3281_s10 = smov [#allocation16]   ;;  %s3282_s21 = smov [#allocation17]  }
  0xae   : > { %s402_s14 = sshll.u32 %s3281_s10, 4  ;;  %s413_s25 = sshll.u32 %s3282_s21, 4  ;;  %s403_s14 = int_to_ptr.vmem [resolvable:$true] %s402_s14  ;;  %s3534_s25 = int_to_ptr.vmem [resolvable:$true] %s413_s25 }
  0xaf   : > { %s3029_s26 = scalar_lea.hbm %s4039_s8, 16 }
  0xb0   : > { %p3030_p1 = scmp.ne.s32.totalorder %s4039_s8, %s3029_s26  ;;  %p3036_p12 = scmp.lt.u32.totalorder %s3029_s26, %s4039_s8 }
  0xb2   : > { %p3032_p3 = pnand %p3030_p1, %p3411_p8 }
  0xb4   : > { %p3033_p11 = pneg %p3032_p3 }
  0xb6   : > { %p3038_p13 = pnand %p3036_p12, %p3033_p11 }
  0xb8   : > { %3041 = shalt.err (!%p3038_p13)
}
  0xb9   : > { %s3042_s29 = scalar_lea.vmem %s403_s14, 16  ;;  %s3049_s11 = scalar_lea.vmem %s403_s14, 32 }
  0xba   : > { %p3043_p0 = scmp.ne.s32.totalorder %s403_s14, %s3042_s29  ;;  %p3050_p7 = scmp.lt.s32.totalorder %s403_s14, %s403_s14 }
  0xbb   : > { %p3051_p9 = scmp.lt.s32.totalorder %s3049_s11, %s3042_s29 }
  0xbc   : > { %p3045_p2 = pnand %p3043_p0, %p3411_p8 }
  0xbd   : > { %p3052_p4 = por %p3051_p9, %p3050_p7 }
  0xbe   : > { %p3046_p5 = pneg %p3045_p2 }
  0xc0   : > { %p3053_p10 = pnand %p3052_p4, %p3046_p5 }
  0xc2   : > { %3056 = shalt.err (!%p3053_p10)
}
  0xc3   : > { %2732 = dma.hbm_to_vmem [thread:$0]  (!%p3395_p6), %s4039_s8, 16, %s403_s14, [#allocation15]  }
  0xc4   : > { %s3057_s22 = scalar_lea.hbm %s4040_s9, 16 }
  0xc5   : > { %p3058_p1 = scmp.ne.s32.totalorder %s4040_s9, %s3057_s22  ;;  %p3064_p12 = scmp.lt.u32.totalorder %s3057_s22, %s4040_s9 }
  0xc7   : > { %p3060_p3 = pnand %p3058_p1, %p3411_p8 }
  0xc9   : > { %p3061_p11 = pneg %p3060_p3 }
  0xcb   : > { %p3066_p13 = pnand %p3064_p12, %p3061_p11 }
  0xcd   : > { %3069 = shalt.err (!%p3066_p13)
}
  0xce   : > { %s3070_s14 = scalar_lea.vmem %s3534_s25, 16  ;;  %s3077_s12 = scalar_lea.vmem %s3534_s25, 32 }
  0xcf   : > { %p3071_p0 = scmp.ne.s32.totalorder %s3534_s25, %s3070_s14  ;;  %p3078_p7 = scmp.lt.s32.totalorder %s3534_s25, %s3534_s25 }
  0xd0   : > { %p3079_p9 = scmp.lt.s32.totalorder %s3077_s12, %s3070_s14 }
  0xd1   : > { %p3073_p2 = pnand %p3071_p0, %p3411_p8 }
  0xd2   : > { %p3080_p4 = por %p3079_p9, %p3078_p7 }
  0xd3   : > { %p3074_p5 = pneg %p3073_p2 }
  0xd5   : > { %p3081_p10 = pnand %p3080_p4, %p3074_p5 }
  0xd7   : > { %3084 = shalt.err (!%p3081_p10)
}
  0xd8   : > { %2735 = dma.hbm_to_vmem [thread:$0]  (!%p3395_p6), %s4040_s9, 16, %s3534_s25, [#allocation18]  }
  0xd9   : > { %s2385_s27 = sadd.s32 4294967294, %s3267_s20   ;;  %s3580_s16 = sadd.s32 1, %s3267_s20  }
  0xda   : > { %s42_s30 = ssub.s32 %s3267_s20, %s3580_s16  ;;  %s45_s10 = sadd.s32 1, %s3263_s19 }
  0xdb   : > { %p43_p8 = scmp.eq.s32.totalorder %s42_s30, 0  ;;  %p52_p1 = scmp.ne.s32.totalorder %s3263_s19, %s3259_s18 }
  0xdc   : > { %p53_p3 = scmp.eq.s32.totalorder %s3267_s20, 0  ;;  %p58_p11 = scmp.ne.s32.totalorder %s3259_s18, %s3255_s17 }
  0xdd   : > { %s3591_s21 = scalar_select %p43_p8, %s3263_s19, %s45_s10  }
  0xde   : > { %p3593_p12 = por %p53_p3, %p52_p1  ;;  %p4066_p13 = scmp.eq.s32.totalorder %s3379_s23, 0 }
  0xdf   : > { %p276_p0 = scmp.eq.s32.totalorder %s3379_s23, 1  ;;  %p282_p2 = scmp.eq.s32.totalorder %s2385_s27, 1 }
  0xe0   : > { %p3599_p6 = por %p4066_p13, %p58_p11  ;;  %p2758_p5 = scmp.lt.s32.totalorder %s3267_s20, 2 }
  0xe1   : > { %s3606_s22 = sand.u32 1, %s3263_s19   ;;  %p3608_p7 = por %p276_p0, %p52_p1 }
  0xe2   : > { %s4067_s25 = scalar_select %p3599_p6, 1, 0 }
  0xe3   : > { %s4068_s26 = scalar_select %p3608_p7, 1, 0 }
  0xe4   : > { %p3612_p9 = por %p282_p2, %p58_p11  ;;  %s2396_s15 = sshll.u32 %s3606_s22, 3 }
  0xe5   : > { %s2397_s13 = sshll.u32 %s3267_s20, 7  ;;  %s4070_s0 = sld [smem:[#allocation32_spill]] }
  0xe6   : > { %s4069_s24 = scalar_select %p3612_p9, 1, 0 }
  0xe7   : > { %s428_s11 = scalar_lea.vmem [#allocation2], %s2396_s15  ;;  %p3627_p4 = pnand %p2758_p5, %p3593_p12 }
  0xe8   : > { %s435_s27 = sshll.u32 %s428_s11, 4  ;;  %s2398_s2 = sshll.u32 %s3606_s22, 2  ;;  %s3623_s27 = int_to_ptr.vmem [resolvable:$true] %s435_s27 }
  0xe9   : > { %s425_s14 = scalar_lea.sflag [#allocation3], %s3606_s22  ;;  %p3087_p8 = pneg %p3627_p4 }
  0xeb   : > { %s3621_s29 = scalar_lea.hbm %s4070_s0, %s2397_s13  ;;  %s3090_s28 = scalar_lea.hbm %s4070_s0, 256 }
  0xec   : > { %s3085_s13 = scalar_lea.hbm %s3621_s29, 128  ;;  %p3091_p11 = scmp.lt.u32.totalorder %s3621_s29, %s4070_s0 }
  0xed   : > { %p3086_p10 = scmp.ne.s32.totalorder %s3621_s29, %s3085_s13  ;;  %p3092_p12 = scmp.lt.u32.totalorder %s3090_s28, %s3085_s13 }
  0xee   : > { %p3094_p0 = scmp.lt.u32.totalorder %s3085_s13, %s3621_s29 }
  0xef   : > { %p3088_p1 = pnand %p3087_p8, %p3086_p10  ;;  %p3093_p13 = por %p3092_p12, %p3091_p11 }
  0xf1   : > { %p3089_p3 = pneg %p3088_p1  ;;  %p3095_p2 = por %p3094_p0, %p3093_p13 }
  0xf3   : > { %p3096_p5 = pnand %p3095_p2, %p3089_p3 }
  0xf5   : > { %3099 = shalt.err (!%p3096_p5)
}
  0xf6   : > { %s3100_s10 = scalar_lea.vmem %s3623_s27, 128  ;;  %s3283_s15 = smov [#allocation2]  }
  0xf7   : > { %p3101_p10 = scmp.ne.s32.totalorder %s3623_s27, %s3100_s10  ;;  %s3105_s12 = sshll.u32 %s3283_s15, 4  ;;  %s3106_s12 = int_to_ptr.vmem [resolvable:$false] %s3105_s12 }
  0xf8   : > { %s3107_s3 = scalar_lea.vmem %s3106_s12, 256  ;;  %p3108_p7 = scmp.lt.s32.totalorder %s3623_s27, %s3106_s12 }
  0xf9   : > { %p3103_p1 = pnand %p3101_p10, %p3087_p8  ;;  %p3109_p11 = scmp.lt.s32.totalorder %s3107_s3, %s3100_s10 }
  0xfb   : > { %p3104_p9 = pneg %p3103_p1  ;;  %p3110_p12 = por %p3109_p11, %p3108_p7 }
  0xfd   : > { %p3111_p13 = pnand %p3110_p12, %p3104_p9 }
  0xff   : > { %3114 = shalt.err (!%p3111_p13)
}
 0x100   : > { %2739 = dma.hbm_to_vmem [thread:$0]  (!%p3627_p4), %s3621_s29, 128, %s3623_s27, %s425_s14  }
 0x101   : > { %s2399_s13 = sshll.u32 %s3267_s20, 6  ;;  %s446_s10 = scalar_lea.vmem [#allocation5], %s2398_s2 }
 0x102   : > { %s3663_s15 = scalar_lea.hbm %s4032_s1, %s2399_s13  ;;  %s453_s12 = sshll.u32 %s446_s10, 4  ;;  %s454_s12 = int_to_ptr.vmem [resolvable:$true] %s453_s12 }
 0x103   : > { %s4072_s3 = sand.u32 1, %s3267_s20   ;;  %s3115_s4 = scalar_lea.hbm %s3663_s15, 64 }
 0x104   : > { %s443_s0 = scalar_lea.sflag [#allocation6], %s4072_s3  ;;  %p3116_p7 = scmp.ne.s32.totalorder %s3663_s15, %s3115_s4 }
 0x105   : > { %s3120_s14 = scalar_lea.hbm %s4032_s1, 128  ;;  %p3121_p0 = scmp.lt.u32.totalorder %s3663_s15, %s4032_s1 }
 0x106   : > { %p3118_p9 = pnand %p3116_p7, %p3087_p8  ;;  %p3122_p2 = scmp.lt.u32.totalorder %s3120_s14, %s3115_s4 }
 0x107   : > { %p3124_p10 = scmp.lt.u32.totalorder %s3115_s4, %s3663_s15 }
 0x108   : > { %p3119_p3 = pneg %p3118_p9  ;;  %p3123_p5 = por %p3122_p2, %p3121_p0 }
 0x10a   : > { %p3125_p1 = por %p3124_p10, %p3123_p5 }
 0x10c   : > { %p3126_p11 = pnand %p3125_p1, %p3119_p3 }
 0x10e   : > { %3129 = shalt.err (!%p3126_p11)
}
 0x10f   : > { %s3130_s2 = scalar_lea.vmem %s454_s12, 64  ;;  %s3284_s28 = smov [#allocation5]  }
 0x110   : > { %p3131_p12 = scmp.ne.s32.totalorder %s454_s12, %s3130_s2  ;;  %s3135_s11 = sshll.u32 %s3284_s28, 4  ;;  %s3136_s11 = int_to_ptr.vmem [resolvable:$false] %s3135_s11 }
 0x111   : > { %s3137_s10 = scalar_lea.vmem %s3136_s11, 128  ;;  %p3138_p9 = scmp.lt.s32.totalorder %s454_s12, %s3136_s11 }
 0x112   : > { %p3133_p13 = pnand %p3131_p12, %p3087_p8  ;;  %p3139_p6 = scmp.lt.s32.totalorder %s3137_s10, %s3130_s2 }
 0x114   : > { %p3134_p7 = pneg %p3133_p13  ;;  %p3140_p0 = por %p3139_p6, %p3138_p9 }
 0x116   : > { %p3141_p2 = pnand %p3140_p0, %p3134_p7 }
 0x118   : > { %3144 = shalt.err (!%p3141_p2)
}
 0x119   : > { %2742 = dma.hbm_to_vmem [thread:$0]  (!%p3627_p4), %s3663_s15, 64, %s454_s12, %s443_s0  }
 0x11a   : > { %s4073_s4 = sld [smem:[#allocation31_spill]] }
 0x120   : > { %p4074_p3 = scmp.ne.s32.totalorder %s4073_s4, 0 }
 0x121   : > { %s3691_s3 = sand.u32 (!%p4074_p3), 1, %s3259_s18   ;;  %p4075_p6 = scmp.ne.s32.totalorder (!%p4074_p3), %s4067_s25, 0 }
 0x122   : > { %462 = sbr.rel (%p4074_p3) target bundleno = 3344 (0xd10), region = 60  ;;  %s2401_s29 = sshll.u32 (!%p4074_p3), %s3691_s3, 3 }
 0x123   : > { %s465_s27 = scalar_lea.sflag (!%p4074_p3), [#allocation3], %s3691_s3  ;;  %s3697_s14 = scalar_lea.vmem (!%p4074_p3), [#allocation2], %s2401_s29 }
 0x129   : > { %3218 = dma.done.wait (%p4075_p6), %s465_s27, 128  }
 0x12a   : > { %3220 = vsyncadd (%p4075_p6), %s465_s27, 4294967168  ;;  %s473_s0 = sand.u32 1, %s3379_s23   ;;  %s2402_s30 = sshll.u32 %s3691_s3, 2 }
 0x12b   : > { %s474_s15 = scalar_lea.sflag [#allocation6], %s473_s0  ;;  %s3705_s12 = scalar_lea.vmem [#allocation5], %s2402_s30 }
 0x12c   : > { %3222 = dma.done.wait (%p4075_p6), %s474_s15, 64  }
 0x12d   : > { %3224 = vsyncadd (%p4075_p6), %s474_s15, 4294967232  ;;  %p4076_p4 = scmp.eq.s32.totalorder %s3379_s23, 0 }
 0x12f   : > { %3226 = dma.done.wait (%p4076_p4), [#allocation6], 6144   ;;  %p4077_p8 = pmov %p4076_p4 }
 0x130   : > { %p4078_p5 = pmov %p4076_p4 }
 0x131   : > { %3228 = vsyncadd (%p4077_p8), [#allocation6], 4294961152 }
 0x132   : > { %3230 = dma.done.wait (%p4078_p5), [#allocation9], 2064   ;;  %p4079_p10 = pmov %p4076_p4 }
 0x133   : > { %p4080_p1 = pmov %p4076_p4 }
 0x134   : > { %3232 = vsyncadd (%p4079_p10), [#allocation9], 4294965232 }
 0x135   : > { %3234 = dma.done.wait (%p4080_p1), [#allocation12], 8208   ;;  %p4081_p11 = pmov %p4080_p1 }
 0x136   : > { %p4082_p12 = pmov %p4080_p1 }
 0x137   : > { %3236 = vsyncadd (%p4081_p11), [#allocation12], 4294959088 }
 0x138   : > { %3238 = dma.done.wait (%p4082_p12), [#allocation15], 8208   ;;  %p4083_p13 = pmov %p4080_p1 }
 0x139   : > { %p4084_p7 = pmov %p4080_p1 }
 0x13a   : > { %3240 = vsyncadd (%p4083_p13), [#allocation15], 4294959088 }
 0x13b   : > { %3242 = dma.done.wait (%p4084_p7), [#allocation18], 16   ;;  %p4085_p9 = pmov %p4080_p1 }
 0x13c   : > { %v3285_v0 = vmov 0   ;;  %v3286_v1 = vmov 0.0   ;;  %v564_v2 = vld [vmem:[#allocation7 + $0x8] sm:$0xff]  ;;  %v567_v3 = vld [vmem:[#allocation7 + $0x20] sm:$0xff]  ;;  %v566_v6 = vld [vmem:[#allocation7 + $0x18] sm:$0xff]  ;;  %vm3287_vm0 = vmmov 0  }
 0x13d   : > { %3244 = vsyncadd (%p4085_p9), [#allocation18], 4294967280  ;;  %667 = vmatprep.mubr.bf16.mxu0 %v3285_v0  ;;  %2535 = vmatprep.subr.bf16.mxu1 %v3286_v1  ;;  %v563_v4 = vld [vmem:[#allocation7] sm:$0xff]  ;;  %v612_v5 = vpack.c.bf16 %v567_v3, %v564_v2  ;;  %v570_v7 = vld [vmem:[#allocation7 + $0x38] sm:$0xff]  ;;  %vm718_vm1 = vcmask 130048   ;;  %s3288_s25 = smov 112  }
 0x13e   : > { %v573_v8 = vld [vmem:[#allocation7 + $0x50] sm:$0xff]  ;;  %v611_v9 = vpack.c.bf16 %v566_v6, %v563_v4  ;;  %v572_v12 = vld [vmem:[#allocation7 + $0x48] sm:$0xff]  ;;  %v579_v14 = vld [vmem:[#allocation7 + $0x80] sm:$0xff]  ;;  %2551 = vmatprep.mubr.msk.bf16.mxu1 %vm3287_vm0, %v3286_v1  ;;  %s3289_s22 = smov 96   ;;  %s3290_s13 = smov 80   ;;  %vm784_vm2 = vcmask 1043456  }
 0x13f   : > { %v615_v10 = vpack.c.bf16 %v573_v8, %v570_v7  ;;  %v569_v11 = vld [vmem:[#allocation7 + $0x30] sm:$0xff]  ;;  %v576_v13 = vld [vmem:[#allocation7 + $0x68] sm:$0xff]  ;;  %635 = vmatprep.subr.bf16.mxu0 %v612_v5  ;;  %v575_v17 = vld [vmem:[#allocation7 + $0x60] sm:$0xff]  ;;  %s3291_s2 = smov 64   ;;  %s3292_s28 = smov 48   ;;  %vm767_vm3 = vcmask 64512  }
 0x140   : > { %636 = vmatpush1.bf16.msra.mxu0 %v611_v9  ;;  %v614_v15 = vpack.c.bf16 %v572_v12, %v569_v11  ;;  %v618_v16 = vpack.c.bf16 %v579_v14, %v576_v13  ;;  %v578_v18 = vld [vmem:[#allocation7 + $0x78] sm:$0xff]  ;;  %v585_v20 = vld [vmem:[#allocation7 + $0xb0] sm:$0xff]  ;;  %v584_v24 = vld [vmem:[#allocation7 + $0xa8] sm:$0xff]  ;;  %s3293_s11 = smov 32   ;;  %s3294_s10 = smov 16   ;;  %vm1615_vm4 = vcmask 60416  }
 0x141   : > { %637 = vmatprep.subr.bf16.mxu0 %v615_v10  ;;  %v582_v19 = vld [vmem:[#allocation7 + $0x98] sm:$0xff]  ;;  %v617_v21 = vpack.c.bf16 %v578_v18, %v575_v17  ;;  %v581_v23 = vld [vmem:[#allocation7 + $0x90] sm:$0xff]  ;;  %v588_v25 = vld [vmem:[#allocation7 + $0xc8] sm:$0xff]  ;;  %s2412_s4 = sshll.u32 %s3691_s3, 5  ;;  %vm1653_vm5 = vcmask 261120   ;;  %vm1655_vm6 = vcmask 392192  }
 0x142   : > { %v621_v22 = vpack.c.bf16 %v585_v20, %v582_v19  ;;  %v591_v26 = vld [vmem:[#allocation7 + $0xe0] sm:$0xff]  ;;  %v565_v27 = vld [vmem:[#allocation7 + $0x10] sm:$0xff]  ;;  %v568_v28 = vld [vmem:[#allocation7 + $0x28] sm:$0xff]  ;;  %v620_v30 = vpack.c.bf16 %v584_v24, %v581_v23  ;;  %s3793_s27 = scalar_lea.vmem [#allocation20], %s2412_s4  ;;  %vm1657_vm7 = vcmask 523264   ;;  %vm1659_vm8 = vcmask 654336  }
 0x143   : > { %v571_v29 = vld [vmem:[#allocation7 + $0x40] sm:$0xff]  ;;  %v613_v31 = vpack.c.bf16 %v568_v28, %v565_v27  ;;  %v574_v32 = vld [vmem:[#allocation7 + $0x58] sm:$0xff]  ;;  %v624_v33 = vpack.c.bf16 %v591_v26, %v588_v25  ;;  %v597_v37 = vld [vmem:[#allocation7 + $0x110] sm:$0xff]  ;;  %vm1661_vm9 = vcmask 785408   ;;  %vm1663_vm10 = vcmask 916480   ;;  %s2181_s0 = sshll.u32 %s3793_s27, 4  ;;  %s3953_s0 = int_to_ptr.vmem [resolvable:$true] %s2181_s0 }
 0x144   : > { %638 = vmatpush1.bf16.msra.mxu0 %v614_v15  ;;  %v587_v34 = vld [vmem:[#allocation7 + $0xc0] sm:$0xff]  ;;  %v590_v35 = vld [vmem:[#allocation7 + $0xd8] sm:$0xff]  ;;  %v616_v38 = vpack.c.bf16 %v574_v32, %v571_v29  ;;  %v577_v39 = vld [vmem:[#allocation7 + $0x70] sm:$0xff]  ;;  %p4087_p2 = scmp.ne.s32.totalorder %s4068_s26, 0 }
 0x145   : > { %639 = vmatprep.subr.bf16.mxu0 %v618_v16  ;;  %v594_v36 = vld [vmem:[#allocation7 + $0xf8] sm:$0xff]  ;;  %2536 = vmatpush3.bf16.msra.mxu1 %v613_v31  ;;  %v580_v40 = vld [vmem:[#allocation7 + $0x88] sm:$0xff]  ;;  %v623_v41 = vpack.c.bf16 %v590_v35, %v587_v34  ;;  %v593_v43 = vld [vmem:[#allocation7 + $0xf0] sm:$0xff] }
 0x146   : > { %2537 = vmatprep.subr.bf16.mxu1 %v3286_v1  ;;  %v627_v42 = vpack.c.bf16 %v597_v37, %v594_v36  ;;  %v596_v44 = vld [vmem:[#allocation7 + $0x108] sm:$0xff]  ;;  %v603_v46 = vld [vmem:[#allocation7 + $0x140] sm:$0xff]  ;;  %v619_v47 = vpack.c.bf16 %v580_v40, %v577_v39  ;;  %v586_v49 = vld [vmem:[#allocation7 + $0xb8] sm:$0xff] }
 0x147   : > { %v600_v45 = vld [vmem:[#allocation7 + $0x128] sm:$0xff]  ;;  %v583_v48 = vld [vmem:[#allocation7 + $0xa0] sm:$0xff]  ;;  %v626_v50 = vpack.c.bf16 %v596_v44, %v593_v43  ;;  %v602_v53 = vld [vmem:[#allocation7 + $0x138] sm:$0xff] }
 0x148   : > { %640 = vmatpush1.bf16.msra.mxu0 %v617_v21  ;;  %v630_v51 = vpack.c.bf16 %v603_v46, %v600_v45  ;;  %v599_v52 = vld [vmem:[#allocation7 + $0x120] sm:$0xff]  ;;  %v606_v54 = vld [vmem:[#allocation7 + $0x158] sm:$0xff]  ;;  %v609_v55 = vld [vmem:[#allocation7 + $0x170] sm:$0xff]  ;;  %v622_v56 = vpack.c.bf16 %v586_v49, %v583_v48 }
 0x149   : > { %641 = vmatprep.subr.bf16.mxu0 %v621_v22  ;;  %2538 = vmatpush3.bf16.msra.mxu1 %v616_v38  ;;  %v589_v57 = vld [vmem:[#allocation7 + $0xd0] sm:$0xff]  ;;  %v592_v58 = vld [vmem:[#allocation7 + $0xe8] sm:$0xff]  ;;  %v629_v59 = vpack.c.bf16 %v602_v53, %v599_v52  ;;  %v633_v60 = vpack.c.bf16 %v609_v55, %v606_v54  ;;  %v595_v2 = vld [vmem:[#allocation7 + $0x100] sm:$0xff] }
 0x14a   : > { %2539 = vmatprep.subr.bf16.mxu1 %v3286_v1  ;;  %v605_v61 = vld [vmem:[#allocation7 + $0x150] sm:$0xff]  ;;  %v608_v62 = vld [vmem:[#allocation7 + $0x168] sm:$0xff]  ;;  %v625_v63 = vpack.c.bf16 %v592_v58, %v589_v57  ;;  %v598_v3 = vld [vmem:[#allocation7 + $0x118] sm:$0xff] }
 0x14b   : > { %v632_v4 = vpack.c.bf16 %v608_v62, %v605_v61  ;;  %v3738_v5 = vld [vmem:[%s3697_s14] sm:$0xff]  ;;  %v628_v6 = vpack.c.bf16 %v598_v3, %v595_v2  ;;  %v607_v11 = vld [vmem:[#allocation7 + $0x160] sm:$0xff]  ;;  %v610_v12 = vld [vmem:[#allocation7 + $0x178] sm:$0xff]  ;;  %s2440_s14 = sshll.u32 %s3379_s23, 9 }
 0x14c   : > { %642 = vmatpush1.bf16.msra.mxu0 %v620_v30  ;;  %v562_v7 = vpack.c.bf16 %v3738_v5, %v3738_v5  ;;  %v601_v8 = vld [vmem:[#allocation7 + $0x130] sm:$0xff]  ;;  %v604_v9 = vld [vmem:[#allocation7 + $0x148] sm:$0xff]  ;;  %v634_v13 = vpack.c.bf16 %v610_v12, %v607_v11  ;;  %v560_v27 = vld [vmem:[%s3705_s12] sm:$0xf]  ;;  %s4086_s12 = sld [smem:[#allocation37_spill]] }
 0x14d   : > { %643 = vmatprep.subr.bf16.mxu0 %v624_v33  ;;  %2540 = vmatpush3.bf16.msra.mxu1 %v619_v47  ;;  %v631_v10 = vpack.c.bf16 %v604_v9, %v601_v8  ;;  %v3774_v28 = vunpack.c.l.bf16 %v560_v27 }
 0x14e   : > { %2541 = vmatprep.subr.bf16.mxu1 %v3286_v1 }
 0x150   : > { %644 = vmatpush1.bf16.msra.mxu0 %v623_v41 }
 0x151   : > { %645 = vmatprep.subr.bf16.mxu0 %v627_v42  ;;  %2542 = vmatpush3.bf16.msra.mxu1 %v622_v56 }
 0x152   : > { %2543 = vmatprep.subr.bf16.mxu1 %v3286_v1 }
 0x154   : > { %646 = vmatpush1.bf16.msra.mxu0 %v626_v50 }
 0x155   : > { %647 = vmatprep.subr.bf16.mxu0 %v630_v51  ;;  %2544 = vmatpush3.bf16.msra.mxu1 %v625_v63 }
 0x156   : > { %2545 = vmatprep.subr.bf16.mxu1 %v3286_v1 }
 0x158   : > { %648 = vmatpush1.bf16.msra.mxu0 %v629_v59 }
 0x159   : > { %649 = vmatprep.subr.bf16.mxu0 %v633_v60  ;;  %2546 = vmatpush3.bf16.msra.mxu1 %v628_v6 }
 0x15a   : > { %2547 = vmatprep.subr.bf16.mxu1 %v3286_v1 }
 0x15c   : > { %650 = vmatpush1.bf16.msra.mxu0 %v632_v4 }
 0x15d   : > { %2579 = vmatprep.subr.bf16.mxu0 %v3286_v1  ;;  %2548 = vmatpush3.bf16.msra.mxu1 %v631_v10 }
 0x15e   : > { %2549 = vmatprep.subr.bf16.mxu1 %v3286_v1 }
 0x15f   : > { %668 = vmatmul.mubr.bf16.vlgmr.msra.gmra.mrb[0].mxu0 %v562_v7 }
 0x160   : > { %2581 = vmatprep.mubr.msk.bf16.mxu0 %vm3287_vm0, %v3286_v1 }
 0x161   : > { %2550 = vmatpush3.bf16.msra.mxu1 %v634_v13 }
 0x162   : > { %2555 = vmatprep.subr.bf16.mxu1 %v3286_v1 }
 0x164   : > { %2552 = vmatmul.mubr.bf16.vlgmr.msra.gmra.mrb[0].mxu1 %v562_v7 }
 0x165   : > { %2557 = vmatprep.mubr.msk.bf16.mxu1 %vm3287_vm0, %v3286_v1 }
 0x232   : > { %v669_v14 = vpop.f32.mrb[0].mxu0 }
 0x233   : > { %v671_v15 = vpop.f32.mrb[1].mxu0  ;;  %v716_v20 = vpack.c.bf16 %v669_v14, %v669_v14 }
 0x234   : > { %v717_v16 = vpack.c.bf16 %v671_v15, %v671_v15  ;;  %v673_v17 = vpop.f32.mrb[2].mxu0 }
 0x235   : > { %v674_v18 = vpop.f32.mrb[3].mxu0 }
 0x236   : > { %832 = vrot.lane.b32.xlu1 %v717_v16, %s3288_s25  ;;  %v723_v19 = vsel %vm718_vm1, %v717_v16, 0 }
 0x237   : > { %2556 = vmatpush3.bf16.xpose.msra.mxu1 %v723_v19  ;;  %v710_v21 = vpop.f32.mrb[0].mxu1 }
 0x238   : > { %2561 = vmatprep.subr.bf16.mxu1 %v3286_v1  ;;  %v3768_v22 = vpack.c.bf16 %v710_v21, %v710_v21  ;;  %v2553_v23 = vpop.f32.mrb[1].mxu1 }
 0x239   : > { %v713_v24 = vpop.f32.mrb[2].mxu1 }
 0x23a   : > { %829 = vrot.lane.b32.xlu1 %v716_v20, %s3288_s25  ;;  %v2554_v25 = vpop.f32.mrb[3].mxu1  ;;  %v786_v26 = vsel %vm784_vm2, %v3768_v22, 0 }
 0x23e   : > { %943 = vrot.lane.b32.xlu1 %v716_v20, %s3289_s22  ;;  %2558 = vmatmul.mubr.msk.bf16.vlgmr.msra.gmra.mrb[4].mxu1 %vm718_vm1, %v716_v20 }
 0x23f   : > { %2563 = vmatprep.mubr.msk.bf16.mxu1 %vm3287_vm0, %v3286_v1  ;;  %2562 = vmatpush3.bf16.msra.mxu1 %v786_v26 }
 0x240   : > { %2567 = vmatprep.subr.bf16.mxu1 %v3286_v1 }
 0x242   : > { %1057 = vrot.lane.b32.xlu1 %v717_v16, %s3290_s13 }
 0x246   : > { %1055 = vrot.lane.b32.xlu1 %v716_v20, %s3290_s13 }
 0x24a   : > { %1169 = vrot.lane.b32.xlu1 %v717_v16, %s3291_s2 }
 0x24e   : > { %1167 = vrot.lane.b32.xlu1 %v716_v20, %s3291_s2 }
 0x252   : > { %1281 = vrot.lane.b32.xlu1 %v717_v16, %s3292_s28 }
 0x256   : > { %1393 = vrot.lane.b32.xlu1 %v717_v16, %s3293_s11 }
 0x25a   : > { %1505 = vrot.lane.b32.xlu1 %v717_v16, %s3294_s10 }
 0x2a8   : > { %v833_v41 = vpop.permute.xlu1 %832 }
 0x2a9   : > { %v838_v54 = vsel %vm718_vm1, %v833_v41, 0 }
 0x2ac   : > { %v830_v42 = vpop.permute.xlu1 %829 }
 0x2b0   : > { %v944_v43 = vpop.permute.xlu1 %943 }
 0x2b4   : > { %v1058_v45 = vpop.permute.xlu1 %1057 }
 0x2b5   : > { %v1063_v51 = vsel %vm718_vm1, %v1058_v45, 0 }
 0x2b8   : > { %v1056_v48 = vpop.permute.xlu1 %1055 }
 0x2bc   : > { %v1170_v52 = vpop.permute.xlu1 %1169 }
 0x2bd   : > { %v1175_v56 = vsel %vm718_vm1, %v1170_v52, 0 }
 0x2c0   : > { %v1168_v55 = vpop.permute.xlu1 %1167 }
 0x2c4   : > { %v1282_v57 = vpop.permute.xlu1 %1281 }
 0x2c5   : > { %v1287_v58 = vsel %vm718_vm1, %v1282_v57, 0 }
 0x2c8   : > { %v1394_v59 = vpop.permute.xlu1 %1393 }
 0x2c9   : > { %v1399_v61 = vsel %vm718_vm1, %v1394_v59, 0 }
 0x2cc   : > { %v1506_v62 = vpop.permute.xlu1 %1505 }
 0x2cd   : > { %v1511_v2 = vsel %vm718_vm1, %v1506_v62, 0 }
 0x311   : > { %v759_v29 = vpop.f32.mrb[4].mxu1 }
 0x312   : > { %v765_v30 = vmul.f32 0.25, %v759_v29  ;;  %v2559_v31 = vpop.f32.mrb[5].mxu1 }
 0x313   : > { %v762_v32 = vpop.f32.mrb[6].mxu1 }
 0x314   : > { %v2560_v33 = vpop.f32.mrb[7].mxu1  ;;  %v766_v34 = vadd.f32 %v765_v30, %v3774_v28 }
 0x316   : > { %v768_v35 = vsel %vm767_vm3, %v766_v34, -inf }
 0x317   : > { %769 = vmax.xlane.f32.xlu0 %v768_v35 }
 0x3a4   : > { %v770_v36 = vpop.xlane.xlu0 %769 }
 0x3a5   : > { %v771_v37 = vsub.f32 %v766_v34, %v770_v36 }
 0x3a7   : > { %v772_v38 = vmul.f32 1.442695, %v771_v37 }
 0x3a9   : > { %2825 = vpow2.f32 %v772_v38 }
 0x3b3   : > { %v2826_v39 = vpop.eup %2825 }
 0x3b4   : > { %v774_v40 = vsel %vm767_vm3, %v2826_v39, 0.0 }
 0x3b5   : > { %775 = vadd.xlane.f32.xlu0 %v774_v40 }
 0x3cb   : > { %945 = vrot.lane.b32.xlu0 %v717_v16, %s3289_s22 }
 0x3cf   : > { %1279 = vrot.lane.b32.xlu0 %v716_v20, %s3292_s28 }
 0x3d3   : > { %1391 = vrot.lane.b32.xlu0 %v716_v20, %s3293_s11 }
 0x3d7   : > { %1503 = vrot.lane.b32.xlu0 %v716_v20, %s3294_s10 }
 0x442   : > { %v776_v44 = vpop.xlane.xlu0 %775 }
 0x443   : > { %2827 = vrcp.f32 %v776_v44 }
 0x446   : > { %v946_v46 = vpop.permute.xlu0 %945 }
 0x447   : > { %v951_v47 = vsel %vm718_vm1, %v946_v46, 0 }
 0x448   : > { %2580 = vmatpush3.bf16.xpose.msra.mxu0 %v951_v47 }
 0x449   : > { %2591 = vmatprep.subr.bf16.mxu0 %v3286_v1 }
 0x44a   : > { %v1280_v60 = vpop.permute.xlu0 %1279 }
 0x44d   : > { %v2828_v49 = vpop.eup %2827 }
 0x44e   : > { %v778_v50 = vmul.f32 %v2828_v49, %v2826_v39  ;;  %v1392_v63 = vpop.permute.xlu0 %1391 }
 0x44f   : > { %2582 = vmatmul.mubr.msk.bf16.vlgmr.msra.gmra.mrb[4].mxu0 %vm718_vm1, %v944_v43 }
 0x450   : > { %2592 = vmatpush3.bf16.xpose.msra.mxu0 %v1063_v51  ;;  %v779_v53 = vpack.c.bf16 %v778_v50, %v778_v50  ;;  %2593 = vmatprep.mubr.msk.bf16.mxu0 %vm3287_vm0, %v3286_v1 }
 0x451   : > { %2603 = vmatprep.subr.bf16.mxu0 %v3286_v1 }
 0x452   : > { %2564 = vmatmul.mubr.msk.bf16.vlgmr.msra.gmra.mrb[8].mxu1 %vm767_vm3, %v779_v53  ;;  %1616 = vst.msk [vmem:[%s3793_s27] sm:$0xf] %vm1615_vm4, %v779_v53  ;;  %v1504_v3 = vpop.permute.xlu0 %1503 }
 0x453   : > { %2568 = vmatpush3.bf16.xpose.msra.mxu1 %v838_v54  ;;  %2569 = vmatprep.mubr.msk.bf16.mxu1 %vm3287_vm0, %v3286_v1 }
 0x454   : > { %2573 = vmatprep.subr.bf16.mxu1 %v3286_v1 }
 0x457   : > { %2594 = vmatmul.mubr.msk.bf16.vlgmr.msra.gmra.mrb[8].mxu0 %vm718_vm1, %v1056_v48 }
 0x458   : > { %2604 = vmatpush3.bf16.xpose.msra.mxu0 %v1175_v56  ;;  %2605 = vmatprep.mubr.msk.bf16.mxu0 %vm3287_vm0, %v3286_v1 }
 0x459   : > { %2615 = vmatprep.subr.bf16.mxu0 %v3286_v1 }
 0x45a   : > { %2570 = vmatmul.mubr.msk.bf16.vlgmr.msra.gmra.mrb[12].mxu1 %vm718_vm1, %v830_v42 }
 0x45b   : > { %2575 = vmatprep.mubr.msk.bf16.mxu1 %vm3287_vm0, %v3286_v1 }
 0x45f   : > { %2606 = vmatmul.mubr.msk.bf16.vlgmr.msra.gmra.mrb[12].mxu0 %vm718_vm1, %v1168_v55 }
 0x460   : > { %2616 = vmatpush3.bf16.xpose.msra.mxu0 %v1287_v58  ;;  %2617 = vmatprep.mubr.msk.bf16.mxu0 %vm3287_vm0, %v3286_v1 }
 0x461   : > { %2627 = vmatprep.subr.bf16.mxu0 %v3286_v1 }
 0x467   : > { %2618 = vmatmul.mubr.msk.bf16.vlgmr.msra.gmra.mrb[16].mxu0 %vm718_vm1, %v1280_v60 }
 0x468   : > { %2628 = vmatpush3.bf16.xpose.msra.mxu0 %v1399_v61  ;;  %2629 = vmatprep.mubr.msk.bf16.mxu0 %vm3287_vm0, %v3286_v1 }
 0x469   : > { %2639 = vmatprep.subr.bf16.mxu0 %v3286_v1 }
 0x46f   : > { %2630 = vmatmul.mubr.msk.bf16.vlgmr.msra.gmra.mrb[20].mxu0 %vm718_vm1, %v1392_v63 }
 0x470   : > { %2640 = vmatpush3.bf16.xpose.msra.mxu0 %v1511_v2  ;;  %2641 = vmatprep.mubr.msk.bf16.mxu0 %vm3287_vm0, %v3286_v1 }
 0x471   : > { %2651 = vmatprep.subr.bf16.mxu0 %v3286_v1 }
 0x477   : > { %2642 = vmatmul.mubr.msk.bf16.vlgmr.msra.gmra.mrb[24].mxu0 %vm718_vm1, %v1504_v3 }
 0x478   : > { %2667 = vmatprep.mubr.msk.bf16.mxu0 %vm3287_vm0, %v3286_v1 }
 0x522   : > { %v987_v4 = vpop.f32.mrb[4].mxu0 }
 0x523   : > { %v993_v6 = vmul.f32 0.25, %v987_v4  ;;  %v2583_v7 = vpop.f32.mrb[5].mxu0 }
 0x524   : > { %v990_v8 = vpop.f32.mrb[6].mxu0 }
 0x525   : > { %v3826_v9 = vpop.f32.mrb[8].mxu1  ;;  %v2584_v10 = vpop.f32.mrb[7].mxu0  ;;  %v994_v11 = vadd.f32 %v993_v6, %v3774_v28 }
 0x526   : > { %v2565_v12 = vpop.f32.mrb[9].mxu1 }
 0x527   : > { %v825_v13 = vpop.f32.mrb[10].mxu1  ;;  %v995_v14 = vsel %vm767_vm3, %v994_v11, -inf }
 0x528   : > { %v2566_v15 = vpop.f32.mrb[11].mxu1  ;;  %996 = vmax.xlane.f32.xlu0 %v995_v14 }
 0x52a   : > { %v1099_v16 = vpop.f32.mrb[8].mxu0 }
 0x52b   : > { %v1105_v17 = vmul.f32 0.25, %v1099_v16  ;;  %v2595_v18 = vpop.f32.mrb[9].mxu0 }
 0x52c   : > { %v1102_v19 = vpop.f32.mrb[10].mxu0 }
 0x52d   : > { %v874_v20 = vpop.f32.mrb[12].mxu1  ;;  %v2596_v21 = vpop.f32.mrb[11].mxu0  ;;  %v1106_v23 = vadd.f32 %v1105_v17, %v3774_v28 }
 0x52e   : > { %v880_v24 = vmul.f32 0.25, %v874_v20  ;;  %v2571_v25 = vpop.f32.mrb[13].mxu1 }
 0x52f   : > { %v877_v26 = vpop.f32.mrb[14].mxu1  ;;  %v1107_v27 = vsel %vm767_vm3, %v1106_v23, -inf }
 0x530   : > { %v2572_v29 = vpop.f32.mrb[15].mxu1  ;;  %1108 = vmax.xlane.f32.xlu0 %v1107_v27  ;;  %v881_v30 = vadd.f32 %v880_v24, %v3774_v28 }
 0x532   : > { %v1211_v31 = vpop.f32.mrb[12].mxu0  ;;  %v882_v32 = vsel %vm767_vm3, %v881_v30, -inf }
 0x533   : > { %v1217_v33 = vmul.f32 0.25, %v1211_v31  ;;  %883 = vmax.xlane.f32.xlu1 %v882_v32  ;;  %v2607_v34 = vpop.f32.mrb[13].mxu0 }
 0x534   : > { %v1214_v35 = vpop.f32.mrb[14].mxu0 }
 0x535   : > { %v2608_v36 = vpop.f32.mrb[15].mxu0  ;;  %v1218_v37 = vadd.f32 %v1217_v33, %v3774_v28 }
 0x537   : > { %v1219_v38 = vsel %vm767_vm3, %v1218_v37, -inf }
 0x538   : > { %1220 = vmax.xlane.f32.xlu1 %v1219_v38 }
 0x53a   : > { %v1323_v39 = vpop.f32.mrb[16].mxu0 }
 0x53b   : > { %v1329_v40 = vmul.f32 0.25, %v1323_v39  ;;  %v2619_v41 = vpop.f32.mrb[17].mxu0 }
 0x53c   : > { %v1326_v42 = vpop.f32.mrb[18].mxu0 }
 0x53d   : > { %v2620_v43 = vpop.f32.mrb[19].mxu0  ;;  %v1330_v44 = vadd.f32 %v1329_v40, %v3774_v28 }
 0x53f   : > { %v1331_v45 = vsel %vm767_vm3, %v1330_v44, -inf }
 0x540   : > { %1332 = vmax.xlane.f32.xlu0 %v1331_v45 }
 0x542   : > { %v1435_v46 = vpop.f32.mrb[20].mxu0 }
 0x543   : > { %v1441_v47 = vmul.f32 0.25, %v1435_v46  ;;  %v2631_v48 = vpop.f32.mrb[21].mxu0 }
 0x544   : > { %v1438_v49 = vpop.f32.mrb[22].mxu0 }
 0x545   : > { %v2632_v50 = vpop.f32.mrb[23].mxu0  ;;  %v1442_v51 = vadd.f32 %v1441_v47, %v3774_v28 }
 0x547   : > { %v1443_v52 = vsel %vm767_vm3, %v1442_v51, -inf }
 0x548   : > { %1444 = vmax.xlane.f32.xlu1 %v1443_v52 }
 0x54a   : > { %v1547_v53 = vpop.f32.mrb[24].mxu0 }
 0x54b   : > { %v1553_v54 = vmul.f32 0.25, %v1547_v53  ;;  %v2643_v55 = vpop.f32.mrb[25].mxu0 }
 0x54c   : > { %v1550_v56 = vpop.f32.mrb[26].mxu0 }
 0x54d   : > { %v2644_v57 = vpop.f32.mrb[27].mxu0  ;;  %v1554_v58 = vadd.f32 %v1553_v54, %v3774_v28 }
 0x54f   : > { %v1555_v59 = vsel %vm767_vm3, %v1554_v58, -inf }
 0x550   : > { %1556 = vmax.xlane.f32.xlu0 %v1555_v59 }
 0x5b5   : > { %v997_v60 = vpop.xlane.xlu0 %996 }
 0x5b6   : > { %v998_v61 = vsub.f32 %v994_v11, %v997_v60 }
 0x5b8   : > { %v999_v62 = vmul.f32 1.442695, %v998_v61 }
 0x5ba   : > { %2829 = vpow2.f32 %v999_v62 }
 0x5bd   : > { %v1109_v63 = vpop.xlane.xlu0 %1108 }
 0x5be   : > { %v1110_v2 = vsub.f32 %v1106_v23, %v1109_v63 }
 0x5c0   : > { %v1111_v3 = vmul.f32 1.442695, %v1110_v2  ;;  %v884_v4 = vpop.xlane.xlu1 %883 }
 0x5c1   : > { %v885_v6 = vsub.f32 %v881_v30, %v884_v4 }
 0x5c2   : > { %2831 = vpow2.f32 %v1111_v3 }
 0x5c3   : > { %v886_v7 = vmul.f32 1.442695, %v885_v6 }
 0x5c4   : > { %v2830_v8 = vpop.eup %2829 }
 0x5c5   : > { %2833 = vpow2.f32 %v886_v7  ;;  %v1221_v10 = vpop.xlane.xlu1 %1220  ;;  %v1001_v12 = vsel %vm767_vm3, %v2830_v8, 0.0 }
 0x5c6   : > { %v1222_v28 = vsub.f32 %v1218_v37, %v1221_v10  ;;  %1002 = vadd.xlane.f32.xlu0 %v1001_v12 }
 0x5c8   : > { %v1223_v13 = vmul.f32 1.442695, %v1222_v28 }
 0x5ca   : > { %2835 = vpow2.f32 %v1223_v13 }
 0x5cc   : > { %v2832_v14 = vpop.eup %2831 }
 0x5cd   : > { %v1333_v11 = vpop.xlane.xlu0 %1332  ;;  %v1113_v15 = vsel %vm767_vm3, %v2832_v14, 0.0 }
 0x5ce   : > { %v1334_v16 = vsub.f32 %v1330_v44, %v1333_v11  ;;  %1114 = vadd.xlane.f32.xlu1 %v1113_v15 }
 0x5cf   : > { %v2834_v17 = vpop.eup %2833 }
 0x5d0   : > { %v1335_v18 = vmul.f32 1.442695, %v1334_v16  ;;  %v888_v19 = vsel %vm767_vm3, %v2834_v17, 0.0 }
 0x5d2   : > { %2837 = vpow2.f32 %v1335_v18  ;;  %889 = vadd.xlane.f32.xlu1 %v888_v19 }
 0x5d4   : > { %v2836_v20 = vpop.eup %2835 }
 0x5d5   : > { %v1225_v21 = vsel %vm767_vm3, %v2836_v20, 0.0  ;;  %v1445_v25 = vpop.xlane.xlu1 %1444 }
 0x5d6   : > { %1226 = vadd.xlane.f32.xlu0 %v1225_v21  ;;  %v1446_v26 = vsub.f32 %v1442_v51, %v1445_v25 }
 0x5d8   : > { %v1447_v27 = vmul.f32 1.442695, %v1446_v26 }
 0x5da   : > { %2839 = vpow2.f32 %v1447_v27 }
 0x5dc   : > { %v2838_v23 = vpop.eup %2837 }
 0x5dd   : > { %v1337_v24 = vsel %vm767_vm3, %v2838_v23, 0.0  ;;  %v1557_v29 = vpop.xlane.xlu0 %1556 }
 0x5de   : > { %1338 = vadd.xlane.f32.xlu0 %v1337_v24  ;;  %v1558_v30 = vsub.f32 %v1554_v58, %v1557_v29 }
 0x5e0   : > { %v1559_v32 = vmul.f32 1.442695, %v1558_v30  ;;  %v1666_v30 = vld [vmem:[#allocation8] sm:$0xff] }
 0x5e2   : > { %2841 = vpow2.f32 %v1559_v32  ;;  %v1668_v32 = vld [vmem:[#allocation8 + $0x10] sm:$0xff] }
 0x5e3   : > { %895 = vrot.lane.b32.xlu1 %v3768_v22, %s3288_s25 }
 0x5e4   : > { %v3853_v31 = vpop.eup %2839 }
 0x5e5   : > { %v1449_v33 = vsel %vm767_vm3, %v3853_v31, 0.0 }
 0x5ec   : > { %v3857_v34 = vpop.eup %2841 }
 0x5ed   : > { %v1561_v35 = vsel %vm767_vm3, %v3857_v34, 0.0 }
 0x5f4   : > { %1007 = vrot.lane.b32.xlu0 %v3768_v22, %s3289_s22 }
 0x5f8   : > { %1119 = vrot.lane.b32.xlu0 %v3768_v22, %s3290_s13 }
 0x607   : > { %1450 = vadd.xlane.f32.xlu1 %v1449_v33 }
 0x617   : > { %1562 = vadd.xlane.f32.xlu0 %v1561_v35 }
 0x618   : > { %1231 = vrot.lane.b32.xlu1 %v3768_v22, %s3291_s2 }
 0x61c   : > { %1455 = vrot.lane.b32.xlu1 %v3768_v22, %s3293_s11 }
 0x620   : > { %1567 = vrot.lane.b32.xlu1 %v3768_v22, %s3294_s10 }
 0x62d   : > { %1343 = vrot.lane.b32.xlu0 %v3768_v22, %s3292_s28 }
 0x653   : > { %v1003_v36 = vpop.xlane.xlu0 %1002 }
 0x654   : > { %2843 = vrcp.f32 %v1003_v36  ;;  %v1670_v36 = vld [vmem:[#allocation8 + $0x20] sm:$0xff] }
 0x65b   : > { %v1115_v37 = vpop.xlane.xlu1 %1114 }
 0x65c   : > { %2845 = vrcp.f32 %v1115_v37  ;;  %v1671_v37 = vld [vmem:[#allocation8 + $0x28] sm:$0xff] }
 0x65e   : > { %v2844_v38 = vpop.eup %2843 }
 0x65f   : > { %v1005_v39 = vmul.f32 %v2844_v38, %v2830_v8  ;;  %v890_v40 = vpop.xlane.xlu1 %889  ;;  %v1684_v38 = vpack.c.bf16 %v1671_v37, %v1670_v36  ;;  %v1761_v37 = vld [vmem:[#allocation13 + $0x10] sm:$0xff] }
 0x660   : > { %2847 = vrcp.f32 %v890_v40 }
 0x661   : > { %v1006_v41 = vpack.c.bf16 %v1005_v39, %v1005_v39 }
 0x663   : > { %v896_v42 = vpop.permute.xlu1 %895  ;;  %v1227_v43 = vpop.xlane.xlu0 %1226  ;;  %1618 = vst.msk [vmem:[%s3793_s27 + $0x8] sm:$0xf] %vm1615_vm4, %v1006_v41 }
 0x664   : > { %v901_v44 = vsel %vm784_vm2, %v896_v42, 0  ;;  %2849 = vrcp.f32 %v1227_v43  ;;  %v1672_v42 = vld [vmem:[#allocation8 + $0x30] sm:$0xff]  ;;  %v1673_v43 = vld [vmem:[#allocation8 + $0x38] sm:$0xff] }
 0x665   : > { %2574 = vmatpush3.bf16.msra.mxu1 %v901_v44 }
 0x666   : > { %v2846_v22 = vpop.eup %2845  ;;  %2585 = vmatprep.subr.bf16.mxu1 %v3286_v1 }
 0x667   : > { %v1117_v45 = vmul.f32 %v2846_v22, %v2832_v14  ;;  %v1685_v22 = vpack.c.bf16 %v1673_v43, %v1672_v42 }
 0x669   : > { %v1118_v46 = vpack.c.bf16 %v1117_v45, %v1117_v45  ;;  %v1674_v45 = vld [vmem:[#allocation8 + $0x40] sm:$0xff] }
 0x66a   : > { %v2848_v47 = vpop.eup %2847 }
 0x66b   : > { %v892_v48 = vmul.f32 %v2848_v47, %v2834_v17  ;;  %v1339_v49 = vpop.xlane.xlu0 %1338  ;;  %1619 = vst.msk [vmem:[%s3793_s27 + $0xc] sm:$0xf] %vm1615_vm4, %v1118_v46 }
 0x66c   : > { %2851 = vrcp.f32 %v1339_v49  ;;  %v1677_v49 = vld [vmem:[#allocation8 + $0x58] sm:$0xff] }
 0x66d   : > { %v893_v50 = vpack.c.bf16 %v892_v48, %v892_v48  ;;  %v1676_v48 = vld [vmem:[#allocation8 + $0x50] sm:$0xff] }
 0x66e   : > { %v2850_v51 = vpop.eup %2849 }
 0x66f   : > { %v1229_v52 = vmul.f32 %v2850_v51, %v2836_v20  ;;  %2576 = vmatmul.mubr.msk.bf16.vlgmr.msra.gmra.mrb[16].mxu1 %vm767_vm3, %v893_v50  ;;  %1617 = vst.msk [vmem:[%s3793_s27 + $0x4] sm:$0xf] %vm1615_vm4, %v893_v50  ;;  %v1008_v53 = vpop.permute.xlu0 %1007  ;;  %v1687_v50 = vpack.c.bf16 %v1677_v49, %v1676_v48  ;;  %v1678_v51 = vld [vmem:[#allocation8 + $0x60] sm:$0xff]  ;;  %v1776_v48 = vld [vmem:[#allocation13 + $0x88] sm:$0xff] }
 0x670   : > { %v1013_v54 = vsel %vm784_vm2, %v1008_v53, 0  ;;  %2587 = vmatprep.mubr.msk.bf16.mxu1 %vm3287_vm0, %v3286_v1  ;;  %v1780_v49 = vld [vmem:[#allocation13 + $0xa8] sm:$0xff] }
 0x671   : > { %2586 = vmatpush3.bf16.msra.mxu1 %v1013_v54  ;;  %v1230_v55 = vpack.c.bf16 %v1229_v52, %v1229_v52  ;;  %v1679_v52 = vld [vmem:[#allocation8 + $0x68] sm:$0xff] }
 0x672   : > { %2597 = vmatprep.subr.bf16.mxu1 %v3286_v1  ;;  %v1688_v53 = vpack.c.bf16 %v1679_v52, %v1678_v51  ;;  %v1832_v51 = vpack.c.bf16 %v1780_v49, %v1776_v48  ;;  %v1778_v52 = vld [vmem:[#allocation13 + $0x98] sm:$0xff]  ;;  %v1816_v48 = vld [vmem:[#allocation13 + $0x1c8] sm:$0xff] }
 0x673   : > { %1620 = vst.msk [vmem:[%s3793_s27 + $0x10] sm:$0xf] %vm1615_vm4, %v1230_v55  ;;  %v1120_v56 = vpop.permute.xlu0 %1119 }
 0x674   : > { %v1125_v59 = vsel %vm784_vm2, %v1120_v56, 0 }
 0x676   : > { %v2852_v57 = vpop.eup %2851 }
 0x677   : > { %v1341_v58 = vmul.f32 %v2852_v57, %v2838_v23  ;;  %2588 = vmatmul.mubr.msk.bf16.vlgmr.msra.gmra.mrb[20].mxu1 %vm767_vm3, %v1006_v41  ;;  %v1680_v57 = vld [vmem:[#allocation8 + $0x70] sm:$0xff] }
 0x678   : > { %2598 = vmatpush3.bf16.msra.mxu1 %v1125_v59  ;;  %2599 = vmatprep.mubr.msk.bf16.mxu1 %vm3287_vm0, %v3286_v1 }
 0x679   : > { %2609 = vmatprep.subr.bf16.mxu1 %v3286_v1  ;;  %v1342_v60 = vpack.c.bf16 %v1341_v58, %v1341_v58  ;;  %v1681_v58 = vld [vmem:[#allocation8 + $0x78] sm:$0xff] }
 0x67b   : > { %1621 = vst.msk [vmem:[%s3793_s27 + $0x14] sm:$0xf] %vm1615_vm4, %v1342_v60 }
 0x67f   : > { %2600 = vmatmul.mubr.msk.bf16.vlgmr.msra.gmra.mrb[24].mxu1 %vm767_vm3, %v1118_v46  ;;  %v1675_v46 = vld [vmem:[#allocation8 + $0x48] sm:$0xff] }
 0x680   : > { %2611 = vmatprep.mubr.msk.bf16.mxu1 %vm3287_vm0, %v3286_v1  ;;  %v1686_v47 = vpack.c.bf16 %v1675_v46, %v1674_v45  ;;  %v1769_v45 = vld [vmem:[#allocation13 + $0x50] sm:$0xff] }
 0x694   : > { %v1451_v61 = vpop.xlane.xlu1 %1450 }
 0x695   : > { %2853 = vrcp.f32 %v1451_v61 }
 0x698   : > { %v1232_v62 = vpop.permute.xlu1 %1231 }
 0x699   : > { %v1237_v63 = vsel %vm784_vm2, %v1232_v62, 0 }
 0x69a   : > { %2610 = vmatpush3.bf16.msra.mxu1 %v1237_v63 }
 0x69b   : > { %2621 = vmatprep.subr.bf16.mxu1 %v3286_v1 }
 0x69c   : > { %v1456_v10 = vpop.permute.xlu1 %1455 }
 0x69d   : > { %2612 = vmatmul.mubr.msk.bf16.vlgmr.msra.gmra.mrb[28].mxu1 %vm767_vm3, %v1230_v55  ;;  %v1461_v12 = vsel %vm784_vm2, %v1456_v10, 0 }
 0x69e   : > { %2623 = vmatprep.mubr.msk.bf16.mxu1 %vm3287_vm0, %v3286_v1 }
 0x69f   : > { %v2854_v2 = vpop.eup %2853 }
 0x6a0   : > { %v1453_v3 = vmul.f32 %v2854_v2, %v3853_v31  ;;  %v1568_v14 = vpop.permute.xlu1 %1567  ;;  %v1667_v31 = vld [vmem:[#allocation8 + $0x8] sm:$0xff] }
 0x6a1   : > { %v1573_v15 = vsel %vm784_vm2, %v1568_v14, 0  ;;  %v1682_v33 = vpack.c.bf16 %v1667_v31, %v1666_v30  ;;  %v1762_v30 = vld [vmem:[#allocation13 + $0x18] sm:$0xff] }
 0x6a2   : > { %v1454_v4 = vpack.c.bf16 %v1453_v3, %v1453_v3 }
 0x6a3   : > { %2652 = vmatpush3.bf16.msra.mxu0 %v1682_v33  ;;  %v1759_v33 = vld [vmem:[#allocation13] sm:$0xff] }
 0x6a4   : > { %v1563_v6 = vpop.xlane.xlu0 %1562  ;;  %1622 = vst.msk [vmem:[%s3793_s27 + $0x18] sm:$0xf] %vm1615_vm4, %v1454_v4  ;;  %2653 = vmatprep.subr.bf16.mxu0 %v3286_v1 }
 0x6a5   : > { %2855 = vrcp.f32 %v1563_v6 }
 0x6a8   : > { %v1344_v7 = vpop.permute.xlu0 %1343 }
 0x6a9   : > { %v1349_v8 = vsel %vm784_vm2, %v1344_v7, 0 }
 0x6aa   : > { %2622 = vmatpush3.bf16.msra.mxu1 %v1349_v8 }
 0x6ab   : > { %2633 = vmatprep.subr.bf16.mxu1 %v3286_v1 }
 0x6ad   : > { %2624 = vmatmul.mubr.msk.bf16.vlgmr.msra.gmra.mrb[32].mxu1 %vm767_vm3, %v1342_v60  ;;  %v1689_v60 = vpack.c.bf16 %v1681_v58, %v1680_v57 }
 0x6ae   : > { %2634 = vmatpush3.bf16.msra.mxu1 %v1461_v12  ;;  %2635 = vmatprep.mubr.msk.bf16.mxu1 %vm3287_vm0, %v3286_v1 }
 0x6af   : > { %v2856_v28 = vpop.eup %2855  ;;  %2645 = vmatprep.subr.bf16.mxu1 %v3286_v1 }
 0x6b0   : > { %v1565_v13 = vmul.f32 %v2856_v28, %v3857_v34  ;;  %v1669_v34 = vld [vmem:[#allocation8 + $0x18] sm:$0xff] }
 0x6b1   : > { %v1683_v35 = vpack.c.bf16 %v1669_v34, %v1668_v32  ;;  %v1766_v32 = vld [vmem:[#allocation13 + $0x38] sm:$0xff]  ;;  %v1763_v34 = vld [vmem:[#allocation13 + $0x20] sm:$0xff] }
 0x6b2   : > { %v1566_v11 = vpack.c.bf16 %v1565_v13, %v1565_v13  ;;  %v1823_v36 = vpack.c.bf16 %v1763_v34, %v1759_v33  ;;  %v1799_v33 = vld [vmem:[#allocation13 + $0x140] sm:$0xff] }
 0x6b3   : > { %2654 = vmatpush3.bf16.msra.mxu0 %v1683_v35  ;;  %v1826_v35 = vpack.c.bf16 %v1766_v32, %v1762_v30  ;;  %v1802_v30 = vld [vmem:[#allocation13 + $0x158] sm:$0xff]  ;;  %v1803_v34 = vld [vmem:[#allocation13 + $0x160] sm:$0xff] }
 0x6b4   : > { %1623 = vst.msk [vmem:[%s3793_s27 + $0x1c] sm:$0xf] %vm1615_vm4, %v1566_v11  ;;  %2655 = vmatprep.subr.bf16.mxu0 %v3286_v1  ;;  %v1806_v32 = vld [vmem:[#allocation13 + $0x178] sm:$0xff] }
 0x6b5   : > { %2636 = vmatmul.mubr.msk.bf16.vlgmr.msra.gmra.mrb[36].mxu1 %vm767_vm3, %v1454_v4 }
 0x6b6   : > { %2646 = vmatpush3.bf16.msra.mxu1 %v1573_v15  ;;  %2647 = vmatprep.mubr.msk.bf16.mxu1 %vm3287_vm0, %v3286_v1 }
 0x6b7   : > { %2656 = vmatpush3.bf16.msra.mxu0 %v1684_v38  ;;  %v1765_v38 = vld [vmem:[#allocation13 + $0x30] sm:$0xff] }
 0x6b8   : > { %2657 = vmatprep.subr.bf16.mxu0 %v3286_v1 }
 0x6bb   : > { %2658 = vmatpush3.bf16.msra.mxu0 %v1685_v22  ;;  %v1771_v22 = vld [vmem:[#allocation13 + $0x60] sm:$0xff] }
 0x6bc   : > { %2659 = vmatprep.subr.bf16.mxu0 %v3286_v1 }
 0x6bd   : > { %2648 = vmatmul.mubr.msk.bf16.vlgmr.msra.gmra.mrb[40].mxu1 %vm767_vm3, %v1566_v11 }
 0x6be   : > { %1887 = vmatprep.mubr.bf16.mxu1 %v3285_v0 }
 0x6bf   : > { %2660 = vmatpush3.bf16.msra.mxu0 %v1686_v47  ;;  %v1773_v47 = vld [vmem:[#allocation13 + $0x70] sm:$0xff] }
 0x6c0   : > { %2661 = vmatprep.subr.bf16.mxu0 %v3286_v1 }
 0x6c3   : > { %2662 = vmatpush3.bf16.msra.mxu0 %v1687_v50  ;;  %v1829_v50 = vpack.c.bf16 %v1773_v47, %v1769_v45  ;;  %v1813_v47 = vld [vmem:[#allocation13 + $0x1b0] sm:$0xff] }
 0x6c4   : > { %2663 = vmatprep.subr.bf16.mxu0 %v3286_v1 }
 0x6c7   : > { %2664 = vmatpush3.bf16.msra.mxu0 %v1688_v53  ;;  %v1782_v53 = vld [vmem:[#allocation13 + $0xb8] sm:$0xff] }
 0x6c8   : > { %2665 = vmatprep.subr.bf16.mxu0 %v3286_v1 }
 0x6cb   : > { %2666 = vmatpush3.bf16.msra.mxu0 %v1689_v60  ;;  %v1779_v60 = vld [vmem:[#allocation13 + $0xa0] sm:$0xff] }
 0x6cc   : > { %1896 = vmatprep.subr.bf16.mxu0 %v1826_v35  ;;  %v1846_v35 = vpack.c.bf16 %v1806_v32, %v1802_v30  ;;  %v1979_v30 = vld [vmem:[#allocation14 + $0x110] sm:$0xff]  ;;  %v1965_v32 = vld [vmem:[#allocation14 + $0xa0] sm:$0xff] }
 0x742   : > { %v937_v16 = vpop.f32.mrb[16].mxu1 }
 0x743   : > { %1625 = vrot.lane.b32.xlu1 %v937_v16, %s3294_s10  ;;  %v2577_v17 = vpop.f32.mrb[17].mxu1 }
 0x744   : > { %v940_v18 = vpop.f32.mrb[18].mxu1 }
 0x745   : > { %v2578_v19 = vpop.f32.mrb[19].mxu1 }
 0x74a   : > { %v1049_v20 = vpop.f32.mrb[20].mxu1 }
 0x74b   : > { %1629 = vrot.lane.b32.xlu1 %v1049_v20, %s3293_s11  ;;  %v2589_v21 = vpop.f32.mrb[21].mxu1 }
 0x74c   : > { %v1052_v23 = vpop.f32.mrb[22].mxu1 }
 0x74d   : > { %v2590_v24 = vpop.f32.mrb[23].mxu1 }
 0x752   : > { %v1161_v25 = vpop.f32.mrb[24].mxu1 }
 0x753   : > { %1633 = vrot.lane.b32.xlu0 %v1161_v25, %s3292_s28  ;;  %v2601_v26 = vpop.f32.mrb[25].mxu1  ;;  %s3295_s28 = smov [#allocation20]  }
 0x754   : > { %v1164_v27 = vpop.f32.mrb[26].mxu1  ;;  %s3149_s11 = sshll.u32 %s3295_s28, 4  ;;  %s3150_s11 = int_to_ptr.vmem [resolvable:$false] %s3149_s11 }
 0x755   : > { %v2602_v29 = vpop.f32.mrb[27].mxu1  ;;  %v1760_v27 = vld [vmem:[#allocation13 + $0x8] sm:$0xff]  ;;  %s3151_s10 = scalar_lea.vmem %s3150_s11, 1024  ;;  %p3152_p4 = scmp.lt.s32.totalorder %s3953_s0, %s3150_s11 }
 0x756   : > { %v1764_v29 = vld [vmem:[#allocation13 + $0x28] sm:$0xff] }
 0x757   : > { %v1824_v31 = vpack.c.bf16 %v1764_v29, %v1760_v27  ;;  %v1800_v27 = vld [vmem:[#allocation13 + $0x148] sm:$0xff] }
 0x758   : > { %v1804_v29 = vld [vmem:[#allocation13 + $0x168] sm:$0xff] }
 0x759   : > { %1855 = vmatprep.subr.bf16.mxu1 %v1824_v31  ;;  %v1844_v31 = vpack.c.bf16 %v1804_v29, %v1800_v27 }
 0x75a   : > { %1856 = vmatpush1.bf16.msra.mxu1 %v1823_v36  ;;  %v1843_v36 = vpack.c.bf16 %v1803_v34, %v1799_v33  ;;  %v1966_v33 = vld [vmem:[#allocation14 + $0xa8] sm:$0xff]  ;;  %v1997_v34 = vld [vmem:[#allocation14 + $0x1a0] sm:$0xff] }
 0x770   : > { %v1273_v39 = vpop.f32.mrb[28].mxu1 }
 0x771   : > { %1637 = vrot.lane.b32.xlu1 %v1273_v39, %s3291_s2  ;;  %v2613_v40 = vpop.f32.mrb[29].mxu1  ;;  %v1768_v39 = vld [vmem:[#allocation13 + $0x48] sm:$0xff] }
 0x772   : > { %v1276_v41 = vpop.f32.mrb[30].mxu1  ;;  %v1772_v40 = vld [vmem:[#allocation13 + $0x68] sm:$0xff] }
 0x773   : > { %v2614_v44 = vpop.f32.mrb[31].mxu1  ;;  %v1774_v41 = vld [vmem:[#allocation13 + $0x78] sm:$0xff]  ;;  %v1828_v42 = vpack.c.bf16 %v1772_v40, %v1768_v39  ;;  %v1812_v40 = vld [vmem:[#allocation13 + $0x1a8] sm:$0xff] }
 0x774   : > { %v1767_v44 = vld [vmem:[#allocation13 + $0x40] sm:$0xff] }
 0x775   : > { %v1827_v46 = vpack.c.bf16 %v1771_v22, %v1767_v44  ;;  %1857 = vmatprep.subr.bf16.mxu1 %v1828_v42  ;;  %v1814_v42 = vld [vmem:[#allocation13 + $0x1b8] sm:$0xff]  ;;  %v1811_v44 = vld [vmem:[#allocation13 + $0x1a0] sm:$0xff] }
 0x777   : > { %1858 = vmatpush1.bf16.msra.mxu1 %v1827_v46  ;;  %v1809_v46 = vld [vmem:[#allocation13 + $0x190] sm:$0xff] }
 0x778   : > { %1859 = vmatprep.subr.bf16.mxu1 %v1832_v51  ;;  %v1849_v49 = vpack.c.bf16 %v1813_v47, %v1809_v46  ;;  %v1818_v51 = vld [vmem:[#allocation13 + $0x1d8] sm:$0xff]  ;;  %v1951_v47 = vld [vmem:[#allocation14 + $0x30] sm:$0xff] }
 0x780   : > { %v1385_v54 = vpop.f32.mrb[32].mxu1 }
 0x781   : > { %1641 = vrot.lane.b32.xlu0 %v1385_v54, %s3290_s13  ;;  %v2625_v55 = vpop.f32.mrb[33].mxu1  ;;  %v1834_v54 = vpack.c.bf16 %v1782_v53, %v1778_v52  ;;  %v1822_v52 = vld [vmem:[#allocation13 + $0x1f8] sm:$0xff]  ;;  %s3145_s13 = scalar_lea.vmem %s3953_s0, 512 }
 0x782   : > { %v1388_v56 = vpop.f32.mrb[34].mxu1  ;;  %p3146_p0 = scmp.ne.s32.totalorder %s3953_s0, %s3145_s13  ;;  %p3153_p8 = scmp.lt.s32.totalorder %s3151_s10, %s3145_s13 }
 0x783   : > { %v2626_v59 = vpop.f32.mrb[35].mxu1 }
 0x784   : > { %v1775_v59 = vld [vmem:[#allocation13 + $0x80] sm:$0xff]  ;;  %p3147_p3 = pnand %p3146_p0, %p4087_p2  ;;  %p3154_p5 = por %p3153_p8, %p3152_p4 }
 0x786   : > { %p3148_p6 = pneg %p3147_p3 }
 0x788   : > { %v1497_v61 = vpop.f32.mrb[36].mxu1  ;;  %p3155_p10 = pnand %p3154_p5, %p3148_p6 }
 0x789   : > { %1645 = vrot.lane.b32.xlu1 %v1497_v61, %s3289_s22  ;;  %v2637_v62 = vpop.f32.mrb[37].mxu1  ;;  %v1777_v61 = vld [vmem:[#allocation13 + $0x90] sm:$0xff]  ;;  %s2155_s22 = scalar_lea.sflag [#allocation21], %s3691_s3 }
 0x78a   : > { %v1500_v63 = vpop.f32.mrb[38].mxu1  ;;  %v1831_v62 = vpack.c.bf16 %v1779_v60, %v1775_v59  ;;  %v1821_v60 = vld [vmem:[#allocation13 + $0x1f0] sm:$0xff] }
 0x78b   : > { %v2638_v2 = vpop.f32.mrb[39].mxu1  ;;  %v1781_v63 = vld [vmem:[#allocation13 + $0xb0] sm:$0xff] }
 0x78c   : > { %v1833_v2 = vpack.c.bf16 %v1781_v63, %v1777_v61  ;;  %1860 = vmatpush1.bf16.msra.mxu1 %v1831_v62  ;;  %v1961_v62 = vld [vmem:[#allocation14 + $0x80] sm:$0xff]  ;;  %v1962_v63 = vld [vmem:[#allocation14 + $0x88] sm:$0xff] }
 0x790   : > { %v1609_v3 = vpop.f32.mrb[40].mxu1 }
 0x791   : > { %1649 = vrot.lane.b32.xlu0 %v1609_v3, %s3288_s25  ;;  %v2649_v4 = vpop.f32.mrb[41].mxu1  ;;  %v1784_v3 = vld [vmem:[#allocation13 + $0xc8] sm:$0xff]  ;;  %s3951_s25 = scalar_lea.hbm %s4086_s12, %s2440_s14 }
 0x792   : > { %v1612_v6 = vpop.f32.mrb[42].mxu1  ;;  %v1788_v4 = vld [vmem:[#allocation13 + $0xe8] sm:$0xff] }
 0x793   : > { %v2650_v7 = vpop.f32.mrb[43].mxu1  ;;  %v1786_v6 = vld [vmem:[#allocation13 + $0xd8] sm:$0xff] }
 0x794   : > { %v1836_v7 = vpack.c.bf16 %v1788_v4, %v1784_v3  ;;  %v2017_v3 = vpack.c.bf16 %v1962_v63, %v1961_v62  ;;  %v1994_v4 = vld [vmem:[#allocation14 + $0x188] sm:$0xff] }
 0x796   : > { %1861 = vmatprep.subr.bf16.mxu1 %v1836_v7 }
 0x7b5   : > { %v1626_v8 = vpop.permute.xlu1 %1625 }
 0x7b6   : > { %v1652_v28 = vsel %vm718_vm1, %v3826_v9, %v1626_v8  ;;  %v1790_v8 = vld [vmem:[#allocation13 + $0xf8] sm:$0xff] }
 0x7bd   : > { %v1630_v10 = vpop.permute.xlu1 %1629 }
 0x7be   : > { %v1654_v13 = vsel %vm1653_vm5, %v1652_v28, %v1630_v10  ;;  %v1783_v10 = vld [vmem:[#allocation13 + $0xc0] sm:$0xff] }
 0x7c5   : > { %v1634_v1 = vpop.permute.xlu0 %1633 }
 0x7c6   : > { %v1656_v11 = vsel %vm1655_vm6, %v1654_v13, %v1634_v1  ;;  %v1787_v1 = vld [vmem:[#allocation13 + $0xe0] sm:$0xff]  ;;  %v1785_v13 = vld [vmem:[#allocation13 + $0xd0] sm:$0xff] }
 0x7c7   : > { %v1835_v28 = vpack.c.bf16 %v1787_v1, %v1783_v10 }
 0x7c9   : > { %1862 = vmatpush1.bf16.msra.mxu1 %v1835_v28 }
 0x7e3   : > { %v1638_v12 = vpop.permute.xlu1 %1637 }
 0x7e4   : > { %v1658_v16 = vsel %vm1657_vm7, %v1656_v11, %v1638_v12  ;;  %v1838_v12 = vpack.c.bf16 %v1790_v8, %v1786_v6 }
 0x7f3   : > { %v1642_v14 = vpop.permute.xlu0 %1641 }
 0x7f4   : > { %v1660_v17 = vsel %vm1659_vm8, %v1658_v16, %v1642_v14  ;;  %v1789_v14 = vld [vmem:[#allocation13 + $0xf0] sm:$0xff]  ;;  %v1796_v16 = vld [vmem:[#allocation13 + $0x128] sm:$0xff] }
 0x7f5   : > { %v1837_v11 = vpack.c.bf16 %v1789_v14, %v1785_v13  ;;  %v2430_v13 = vld [vmem:[#allocation11] ss:$0 sm:$0xff]  ;;  %v1945_v14 = vld [vmem:[#allocation14] sm:$0xff] }
 0x7fb   : > { %v1646_v15 = vpop.permute.xlu1 %1645 }
 0x7fc   : > { %v1662_v18 = vsel %vm1661_vm9, %v1660_v17, %v1646_v15  ;;  %v1792_v15 = vld [vmem:[#allocation13 + $0x108] sm:$0xff]  ;;  %v1794_v17 = vld [vmem:[#allocation13 + $0x118] sm:$0xff] }
 0x803   : > { %v1650_v19 = vpop.permute.xlu0 %1649 }
 0x804   : > { %v1664_v20 = vsel %vm1663_vm10, %v1662_v18, %v1650_v19  ;;  %v1840_v18 = vpack.c.bf16 %v1796_v16, %v1792_v15  ;;  %v1798_v19 = vld [vmem:[#allocation13 + $0x138] sm:$0xff]  ;;  %v1977_v16 = vld [vmem:[#allocation14 + $0x100] sm:$0xff] }
 0x805   : > { %v1665_v21 = vpack.c.bf16 %v1664_v20, %v1664_v20  ;;  %v1791_v20 = vld [vmem:[#allocation13 + $0x100] sm:$0xff] }
 0x806   : > { %1863 = vmatprep.subr.bf16.mxu1 %v1840_v18  ;;  %v1963_v18 = vld [vmem:[#allocation14 + $0x90] sm:$0xff] }
 0x807   : > { %2668 = vmatmul.mubr.bf16.vlgmr.msra.gmra.mrb[28].mxu0 %v1665_v21  ;;  %v1795_v21 = vld [vmem:[#allocation13 + $0x120] sm:$0xff] }
 0x808   : > { %1928 = vmatprep.mubr.bf16.mxu0 %v3285_v0  ;;  %v1825_v0 = vpack.c.bf16 %v1765_v38, %v1761_v37  ;;  %v1801_v37 = vld [vmem:[#allocation13 + $0x150] sm:$0xff] }
 0x809   : > { %v1805_v38 = vld [vmem:[#allocation13 + $0x170] sm:$0xff] }
 0x80a   : > { %1897 = vmatpush1.bf16.msra.mxu0 %v1825_v0  ;;  %v1845_v39 = vpack.c.bf16 %v1805_v38, %v1801_v37  ;;  %v1808_v0 = vld [vmem:[#allocation13 + $0x188] sm:$0xff]  ;;  %v1949_v38 = vld [vmem:[#allocation14 + $0x20] sm:$0xff] }
 0x8da   : > { %v1724_v23 = vpop.f32.mrb[28].mxu0 }
 0x8db   : > { %v1725_v9 = vadd.f32 %v1724_v23, %v3738_v5  ;;  %v2669_v24 = vpop.f32.mrb[29].mxu0  ;;  %v1770_v5 = vld [vmem:[#allocation13 + $0x58] sm:$0xff]  ;;  %v1842_v23 = vpack.c.bf16 %v1798_v19, %v1794_v17  ;;  %v1978_v17 = vld [vmem:[#allocation14 + $0x108] sm:$0xff] }
 0x8dc   : > { %v1727_v25 = vpop.f32.mrb[30].mxu0  ;;  %v1830_v43 = vpack.c.bf16 %v1774_v41, %v1770_v5  ;;  %v1793_v24 = vld [vmem:[#allocation13 + $0x110] sm:$0xff]  ;;  %v1810_v5 = vld [vmem:[#allocation13 + $0x198] sm:$0xff]  ;;  %v1848_v41 = vpack.c.bf16 %v1812_v40, %v1808_v0  ;;  %v2019_v0 = vpack.c.bf16 %v1966_v33, %v1965_v32 }
 0x8dd   : > { %1732 = vadd.xlane.f32.xlu1 %v1725_v9  ;;  %v2670_v26 = vpop.f32.mrb[31].mxu0  ;;  %v1797_v25 = vld [vmem:[#allocation13 + $0x130] sm:$0xff]  ;;  %v1850_v22 = vpack.c.bf16 %v1814_v42, %v1810_v5  ;;  %v1964_v19 = vld [vmem:[#allocation14 + $0x98] sm:$0xff]  ;;  %v1981_v5 = vld [vmem:[#allocation14 + $0x120] sm:$0xff] }
 0x8de   : > { %1898 = vmatprep.subr.bf16.mxu0 %v1830_v43  ;;  %v1841_v26 = vpack.c.bf16 %v1797_v25, %v1793_v24  ;;  %v1807_v43 = vld [vmem:[#allocation13 + $0x180] sm:$0xff]  ;;  %v2025_v24 = vpack.c.bf16 %v1978_v17, %v1977_v16  ;;  %v1947_v25 = vld [vmem:[#allocation14 + $0x10] sm:$0xff]  ;;  %v1974_v17 = vld [vmem:[#allocation14 + $0xe8] sm:$0xff] }
 0x8df   : > { %1899 = vmatpush1.bf16.msra.mxu0 %v1829_v50  ;;  %v1847_v45 = vpack.c.bf16 %v1811_v44, %v1807_v43  ;;  %v1820_v50 = vld [vmem:[#allocation13 + $0x1e8] sm:$0xff]  ;;  %v1967_v42 = vld [vmem:[#allocation14 + $0xb0] sm:$0xff]  ;;  %v1968_v43 = vld [vmem:[#allocation14 + $0xb8] sm:$0xff] }
 0x8e0   : > { %1900 = vmatprep.subr.bf16.mxu0 %v1834_v54  ;;  %v1852_v53 = vpack.c.bf16 %v1820_v50, %v1816_v48  ;;  %v1854_v54 = vpack.c.bf16 %v1822_v52, %v1818_v51  ;;  %v1999_v44 = vld [vmem:[#allocation14 + $0x1b0] sm:$0xff]  ;;  %v1952_v48 = vld [vmem:[#allocation14 + $0x38] sm:$0xff]  ;;  %v1973_v16 = vld [vmem:[#allocation14 + $0xe0] sm:$0xff] }
 0x8e1   : > { %v1983_v51 = vld [vmem:[#allocation14 + $0x130] sm:$0xff]  ;;  %v1984_v52 = vld [vmem:[#allocation14 + $0x138] sm:$0xff] }
 0x8e2   : > { %v1976_v32 = vld [vmem:[#allocation14 + $0xf8] sm:$0xff]  ;;  %v2007_v33 = vld [vmem:[#allocation14 + $0x1f0] sm:$0xff] }
 0x8e3   : > { %1901 = vmatpush1.bf16.msra.mxu0 %v1833_v2  ;;  %v1993_v2 = vld [vmem:[#allocation14 + $0x180] sm:$0xff] }
 0x8e4   : > { %1902 = vmatprep.subr.bf16.mxu0 %v1838_v12  ;;  %v2033_v6 = vpack.c.bf16 %v1994_v4, %v1993_v2  ;;  %v2429_v12 = vld [vmem:[#allocation10] ss:$0 sm:$0xff]  ;;  %v1985_v2 = vld [vmem:[#allocation14 + $0x140] sm:$0xff]  ;;  %v1971_v4 = vld [vmem:[#allocation14 + $0xd0] sm:$0xff] }
 0x8e7   : > { %1903 = vmatpush1.bf16.msra.mxu0 %v1837_v11  ;;  %v1946_v11 = vld [vmem:[#allocation14 + $0x8] sm:$0xff] }
 0x8e8   : > { %1904 = vmatprep.subr.bf16.mxu0 %v1842_v23 }
 0x8eb   : > { %1905 = vmatpush1.bf16.msra.mxu0 %v1841_v26  ;;  %v1948_v26 = vld [vmem:[#allocation14 + $0x18] sm:$0xff] }
 0x8ec   : > { %1906 = vmatprep.subr.bf16.mxu0 %v1846_v35  ;;  %v1998_v35 = vld [vmem:[#allocation14 + $0x1a8] sm:$0xff] }
 0x8ed   : > { %v2035_v40 = vpack.c.bf16 %v1998_v35, %v1997_v34  ;;  %v2008_v35 = vld [vmem:[#allocation14 + $0x1f8] sm:$0xff] }
 0x8ef   : > { %1907 = vmatpush1.bf16.msra.mxu0 %v1845_v39  ;;  %v1950_v39 = vld [vmem:[#allocation14 + $0x28] sm:$0xff] }
 0x8f0   : > { %1908 = vmatprep.subr.bf16.mxu0 %v1850_v22  ;;  %v2000_v22 = vld [vmem:[#allocation14 + $0x1b8] sm:$0xff] }
 0x8f1   : > { %v2036_v50 = vpack.c.bf16 %v2000_v22, %v1999_v44 }
 0x8f3   : > { %1909 = vmatpush1.bf16.msra.mxu0 %v1849_v49  ;;  %v2020_v49 = vpack.c.bf16 %v1968_v43, %v1967_v42 }
 0x8f4   : > { %1910 = vmatprep.subr.bf16.mxu0 %v1854_v54  ;;  %v1970_v54 = vld [vmem:[#allocation14 + $0xc8] sm:$0xff] }
 0x96a   : > { %v1733_v55 = vpop.xlane.xlu1 %1732 }
 0x96b   : > { %v1735_v56 = vmul.f32 0.0078125, %v1733_v55  ;;  %v1815_v55 = vld [vmem:[#allocation13 + $0x1c0] sm:$0xff] }
 0x96d   : > { %v3936_v57 = vsub.f32 %v1725_v9, %v1735_v56  ;;  %v1839_v9 = vpack.c.bf16 %v1795_v21, %v1791_v20  ;;  %v1819_v56 = vld [vmem:[#allocation13 + $0x1e0] sm:$0xff]  ;;  %v1995_v20 = vld [vmem:[#allocation14 + $0x190] sm:$0xff]  ;;  %v1996_v21 = vld [vmem:[#allocation14 + $0x198] sm:$0xff] }
 0x96e   : > { %v1851_v59 = vpack.c.bf16 %v1819_v56, %v1815_v55  ;;  %v2034_v29 = vpack.c.bf16 %v1996_v21, %v1995_v20  ;;  %v2001_v55 = vld [vmem:[#allocation14 + $0x1c0] sm:$0xff]  ;;  %v2002_v56 = vld [vmem:[#allocation14 + $0x1c8] sm:$0xff] }
 0x96f   : > { %v1737_v58 = vmul.f32 %v3936_v57, %v3936_v57  ;;  %1864 = vmatpush1.bf16.msra.mxu1 %v1839_v9  ;;  %v2009_v9 = vpack.c.bf16 %v1946_v11, %v1945_v14  ;;  %v2037_v63 = vpack.c.bf16 %v2002_v56, %v2001_v55  ;;  %v1987_v11 = vld [vmem:[#allocation14 + $0x150] sm:$0xff] }
 0x970   : > { %1865 = vmatprep.subr.bf16.mxu1 %v1844_v31  ;;  %v1980_v31 = vld [vmem:[#allocation14 + $0x118] sm:$0xff] }
 0x971   : > { %1738 = vadd.xlane.f32.xlu0 %v1737_v58  ;;  %v1817_v58 = vld [vmem:[#allocation13 + $0x1d0] sm:$0xff]  ;;  %v2026_v37 = vpack.c.bf16 %v1980_v31, %v1979_v30 }
 0x972   : > { %v1853_v61 = vpack.c.bf16 %v1821_v60, %v1817_v58  ;;  %v2012_v58 = vpack.c.bf16 %v1952_v48, %v1951_v47  ;;  %v1953_v60 = vld [vmem:[#allocation14 + $0x40] sm:$0xff]  ;;  %v1975_v31 = vld [vmem:[#allocation14 + $0xf0] sm:$0xff] }
 0x973   : > { %1866 = vmatpush1.bf16.msra.mxu1 %v1843_v36  ;;  %v2010_v36 = vpack.c.bf16 %v1948_v26, %v1947_v25  ;;  %v1957_v25 = vld [vmem:[#allocation14 + $0x60] sm:$0xff]  ;;  %v1958_v26 = vld [vmem:[#allocation14 + $0x68] sm:$0xff]  ;;  %v2024_v34 = vpack.c.bf16 %v1976_v32, %v1975_v31 }
 0x974   : > { %1867 = vmatprep.subr.bf16.mxu1 %v1848_v41  ;;  %1911 = vmatpush1.bf16.msra.mxu0 %v1853_v61  ;;  %v1982_v41 = vld [vmem:[#allocation14 + $0x128] sm:$0xff] }
 0x975   : > { %2513 = vmatprep.subr.bf16.mxu0 %v2033_v6  ;;  %v2027_v46 = vpack.c.bf16 %v1982_v41, %v1981_v5  ;;  %v1954_v61 = vld [vmem:[#allocation14 + $0x48] sm:$0xff]  ;;  %v1972_v6 = vld [vmem:[#allocation14 + $0xd8] sm:$0xff] }
 0x977   : > { %1868 = vmatpush1.bf16.msra.mxu1 %v1847_v45  ;;  %v2011_v45 = vpack.c.bf16 %v1950_v39, %v1949_v38  ;;  %v2040_v38 = vpack.c.bf16 %v2008_v35, %v2007_v33 }
 0x978   : > { %1869 = vmatprep.subr.bf16.mxu1 %v1852_v53  ;;  %v1969_v53 = vld [vmem:[#allocation14 + $0xc0] sm:$0xff] }
 0x979   : > { %v2021_v62 = vpack.c.bf16 %v1970_v54, %v1969_v53 }
 0x97b   : > { %1870 = vmatpush1.bf16.msra.mxu1 %v1851_v59  ;;  %v2028_v59 = vpack.c.bf16 %v1984_v52, %v1983_v51 }
 0x97c   : > { %2491 = vmatprep.subr.bf16.mxu1 %v2017_v3  ;;  %v1986_v3 = vld [vmem:[#allocation14 + $0x148] sm:$0xff] }
 0x9fe   : > { %v1739_v7 = vpop.xlane.xlu0 %1738 }
 0x9ff   : > { %v1740_v8 = vmul.f32 0.0078125, %v1739_v7  ;;  %v2003_v7 = vld [vmem:[#allocation14 + $0x1d0] sm:$0xff] }
 0xa01   : > { %v1741_v10 = vadd.f32 1e-05, %v1740_v8  ;;  %v2004_v8 = vld [vmem:[#allocation14 + $0x1d8] sm:$0xff] }
 0xa02   : > { %v2038_v14 = vpack.c.bf16 %v2004_v8, %v2003_v7 }
 0xa03   : > { %2857 = vrsqrt.f32 %v1741_v10  ;;  %v2013_v10 = vpack.c.bf16 %v1954_v61, %v1953_v60 }
 0xa0d   : > { %v2858_v1 = vpop.eup %2857 }
 0xa0e   : > { %v1743_v28 = vmul.f32 %v2858_v1, %v3936_v57  ;;  %v2018_v57 = vpack.c.bf16 %v1964_v19, %v1963_v18  ;;  %v2029_v1 = vpack.c.bf16 %v1986_v3, %v1985_v2  ;;  %v2005_v18 = vld [vmem:[#allocation14 + $0x1e0] sm:$0xff]  ;;  %v2006_v19 = vld [vmem:[#allocation14 + $0x1e8] sm:$0xff] }
 0xa10   : > { %v1750_v15 = vmul.f32 %v2429_v12, %v1743_v28  ;;  %v1955_v12 = vld [vmem:[#allocation14 + $0x50] sm:$0xff]  ;;  %v1956_v28 = vld [vmem:[#allocation14 + $0x58] sm:$0xff] }
 0xa11   : > { %v2014_v20 = vpack.c.bf16 %v1956_v28, %v1955_v12 }
 0xa12   : > { %v3941_v23 = vadd.f32 %v2430_v13, %v1750_v15  ;;  %v2022_v13 = vpack.c.bf16 %v1972_v6, %v1971_v4  ;;  %v1988_v15 = vld [vmem:[#allocation14 + $0x158] sm:$0xff] }
 0xa13   : > { %v2030_v21 = vpack.c.bf16 %v1988_v15, %v1987_v11 }
 0xa14   : > { %v1758_v27 = vpack.c.bf16 %v3941_v23, %v3941_v23 }
 0xa16   : > { %1888 = vmatmul.mubr.bf16.vlgmr.msra.gmra.mrb[44].mxu1 %v1758_v27  ;;  %1929 = vmatmul.mubr.bf16.vlgmr.msra.gmra.mrb[32].mxu0 %v1758_v27  ;;  %v1989_v27 = vld [vmem:[#allocation14 + $0x160] sm:$0xff] }
 0xa17   : > { %2492 = vmatpush3.bf16.msra.mxu1 %v2009_v9  ;;  %2514 = vmatpush3.bf16.msra.mxu0 %v2025_v24  ;;  %v2023_v9 = vpack.c.bf16 %v1974_v17, %v1973_v16  ;;  %v2039_v24 = vpack.c.bf16 %v2006_v19, %v2005_v18 }
 0xa18   : > { %2493 = vmatprep.subr.bf16.mxu1 %v2018_v57  ;;  %2515 = vmatprep.subr.bf16.mxu0 %v2034_v29  ;;  %v2015_v57 = vpack.c.bf16 %v1958_v26, %v1957_v25  ;;  %v1990_v29 = vld [vmem:[#allocation14 + $0x168] sm:$0xff] }
 0xa19   : > { %v2031_v30 = vpack.c.bf16 %v1990_v29, %v1989_v27 }
 0xa1b   : > { %2494 = vmatpush3.bf16.msra.mxu1 %v2010_v36  ;;  %2516 = vmatpush3.bf16.msra.mxu0 %v2026_v37  ;;  %v1959_v36 = vld [vmem:[#allocation14 + $0x70] sm:$0xff]  ;;  %v1960_v37 = vld [vmem:[#allocation14 + $0x78] sm:$0xff] }
 0xa1c   : > { %2495 = vmatprep.subr.bf16.mxu1 %v2019_v0  ;;  %2517 = vmatprep.subr.bf16.mxu0 %v2035_v40  ;;  %v2016_v39 = vpack.c.bf16 %v1960_v37, %v1959_v36  ;;  %v1991_v0 = vld [vmem:[#allocation14 + $0x170] sm:$0xff]  ;;  %v1992_v40 = vld [vmem:[#allocation14 + $0x178] sm:$0xff] }
 0xa1d   : > { %v2032_v5 = vpack.c.bf16 %v1992_v40, %v1991_v0 }
 0xa1f   : > { %2496 = vmatpush3.bf16.msra.mxu1 %v2011_v45  ;;  %2518 = vmatpush3.bf16.msra.mxu0 %v2027_v46 }
 0xa20   : > { %2497 = vmatprep.subr.bf16.mxu1 %v2020_v49  ;;  %2519 = vmatprep.subr.bf16.mxu0 %v2036_v50 }
 0xa23   : > { %2498 = vmatpush3.bf16.msra.mxu1 %v2012_v58  ;;  %2520 = vmatpush3.bf16.msra.mxu0 %v2028_v59 }
 0xa24   : > { %2499 = vmatprep.subr.bf16.mxu1 %v2021_v62  ;;  %2521 = vmatprep.subr.bf16.mxu0 %v2037_v63 }
 0xa27   : > { %2500 = vmatpush3.bf16.msra.mxu1 %v2013_v10  ;;  %2522 = vmatpush3.bf16.msra.mxu0 %v2029_v1 }
 0xa28   : > { %2501 = vmatprep.subr.bf16.mxu1 %v2022_v13  ;;  %2523 = vmatprep.subr.bf16.mxu0 %v2038_v14 }
 0xa2b   : > { %2502 = vmatpush3.bf16.msra.mxu1 %v2014_v20  ;;  %2524 = vmatpush3.bf16.msra.mxu0 %v2030_v21 }
 0xa2c   : > { %2503 = vmatprep.subr.bf16.mxu1 %v2023_v9  ;;  %2525 = vmatprep.subr.bf16.mxu0 %v2039_v24 }
 0xa2f   : > { %2504 = vmatpush3.bf16.msra.mxu1 %v2015_v57  ;;  %2526 = vmatpush3.bf16.msra.mxu0 %v2031_v30 }
 0xa30   : > { %2505 = vmatprep.subr.bf16.mxu1 %v2024_v34  ;;  %2527 = vmatprep.subr.bf16.mxu0 %v2040_v38 }
 0xa33   : > { %2506 = vmatpush3.bf16.msra.mxu1 %v2016_v39  ;;  %2528 = vmatpush3.bf16.msra.mxu0 %v2032_v5 }
 0xae9   : > { %v1889_v41 = vpop.f32.mrb[44].mxu1  ;;  %v1930_v42 = vpop.f32.mrb[32].mxu0 }
 0xaea   : > { %v1937_v43 = vmax.f32 %v1889_v41, 0.0  ;;  %v1939_v44 = vmax.f32 %v1930_v42, 0.0  ;;  %v1891_v22 = vpop.f32.mrb[45].mxu1  ;;  %v1932_v45 = vpop.f32.mrb[33].mxu0 }
 0xaeb   : > { %v1938_v46 = vmax.f32 %v1891_v22, 0.0  ;;  %v1940_v47 = vmax.f32 %v1932_v45, 0.0  ;;  %v1893_v48 = vpop.f32.mrb[46].mxu1  ;;  %v1934_v49 = vpop.f32.mrb[34].mxu0 }
 0xaec   : > { %v1894_v50 = vpop.f32.mrb[47].mxu1  ;;  %v1935_v51 = vpop.f32.mrb[35].mxu0  ;;  %v1941_v54 = vpack.c.bf16 %v1937_v43, %v1937_v43  ;;  %v1943_v55 = vpack.c.bf16 %v1939_v44, %v1939_v44 }
 0xaed   : > { %v1942_v52 = vpack.c.bf16 %v1938_v46, %v1938_v46  ;;  %v1944_v53 = vpack.c.bf16 %v1940_v47, %v1940_v47 }
 0xaef   : > { %2073 = vmatprep.mubr.bf16.mxu1 %v1942_v52  ;;  %2113 = vmatprep.mubr.bf16.mxu0 %v1944_v53 }
 0xaf0   : > { %2074 = vmatmul.mubr.bf16.vlgmr.msra.gmra.mrb[48].mxu1 %v1941_v54  ;;  %2114 = vmatmul.mubr.bf16.vlgmr.msra.gmra.mrb[36].mxu0 %v1943_v55 }
 0xbc3   : > { %v2507_v56 = vpop.f32.mrb[48].mxu1  ;;  %v2529_v58 = vpop.f32.mrb[36].mxu0 }
 0xbc4   : > { %v2508_v59 = vpop.f32.mrb[49].mxu1  ;;  %v2530_v60 = vpop.f32.mrb[37].mxu0 }
 0xbc5   : > { %v2509_v61 = vadd.f32 %v2508_v59, %v2507_v56  ;;  %v2531_v62 = vadd.f32 %v2530_v60, %v2529_v58  ;;  %v2510_v63 = vpop.f32.mrb[50].mxu1  ;;  %v2532_v2 = vpop.f32.mrb[38].mxu0 }
 0xbc6   : > { %v2511_v3 = vpop.f32.mrb[51].mxu1  ;;  %v2533_v4 = vpop.f32.mrb[39].mxu0 }
 0xbc7   : > { %v2076_v6 = vadd.f32 %v2509_v61, %v3941_v23 }
 0xbc9   : > { %v2116_v7 = vadd.f32 %v2531_v62, %v2076_v6 }
 0xbcb   : > { %2123 = vadd.xlane.f32.xlu0 %v2116_v7 }
 0xc58   : > { %v2124_v8 = vpop.xlane.xlu0 %2123 }
 0xc59   : > { %v2125_v10 = vmul.f32 0.0078125, %v2124_v8 }
 0xc5b   : > { %v2126_v1 = vsub.f32 %v2116_v7, %v2125_v10 }
 0xc5d   : > { %v2127_v12 = vmul.f32 %v2126_v1, %v2126_v1 }
 0xc5f   : > { %2128 = vadd.xlane.f32.xlu1 %v2127_v12 }
 0xc60   : > { %3158 = shalt.err (!%p3155_p10)
}
 0xc61   : > { %s3159_s4 = scalar_lea.hbm %s3951_s25, 512  ;;  %s3163_s30 = scalar_lea.hbm %s4086_s12, 1024 }
 0xc62   : > { %p3160_p1 = scmp.ne.s32.totalorder %s3951_s25, %s3159_s4  ;;  %p3164_p13 = scmp.lt.u32.totalorder %s3951_s25, %s4086_s12 }
 0xc63   : > { %p3165_p7 = scmp.lt.u32.totalorder %s3163_s30, %s3159_s4  ;;  %p3167_p0 = scmp.lt.u32.totalorder %s3159_s4, %s3951_s25 }
 0xc64   : > { %p3161_p11 = pnand %p3160_p1, %p4087_p2 }
 0xc65   : > { %p3166_p9 = por %p3165_p7, %p3164_p13 }
 0xc66   : > { %p3162_p12 = pneg %p3161_p11 }
 0xc67   : > { %p3168_p3 = por %p3167_p0, %p3166_p9 }
 0xc69   : > { %p3169_p6 = pnand %p3168_p3, %p3162_p12 }
 0xc6b   : > { %3172 = shalt.err (!%p3169_p6)
}
 0xc6c   : > { %s3296_s13 = smov 4   ;;  %v2431_v11 = vld [vmem:[#allocation16] ss:$0 sm:$0xff]  ;;  %v2432_v16 = vld [vmem:[#allocation17] ss:$0 sm:$0xff]  ;;  %s2435_s11 = sshll.u32 %s3379_s23, 7 }
 0xc6d   : > { %2708 = dma.vmem_to_hbm [thread:$0]  (%p4087_p2), %s3953_s0, 512, %s3951_s25, %s2155_s22, %s3291_s2, %s3291_s2, %s3296_s13  }
 0xc6e   : > { %s550_s10 = scalar_lea.vmem [#allocation19], %s2401_s29  ;;  %s4088_s30 = sld [smem:[#allocation36_spill]] }
 0xc6f   : > { %s2168_s4 = sshll.u32 %s550_s10, 4  ;;  %s2150_s0 = scalar_lea.sflag [#allocation4], %s3691_s3  ;;  %s3989_s4 = int_to_ptr.vmem [resolvable:$true] %s2168_s4 }
 0xc70   : > { %s3173_s25 = scalar_lea.vmem %s3989_s4, 128  ;;  %s3297_s23 = smov [#allocation19]  }
 0xc71   : > { %p3174_p4 = scmp.ne.s32.totalorder %s3989_s4, %s3173_s25  ;;  %s3177_s29 = sshll.u32 %s3297_s23, 4  ;;  %s3178_s29 = int_to_ptr.vmem [resolvable:$false] %s3177_s29 }
 0xc72   : > { %s3179_s22 = scalar_lea.vmem %s3178_s29, 256  ;;  %p3180_p10 = scmp.lt.s32.totalorder %s3989_s4, %s3178_s29 }
 0xc73   : > { %p3175_p8 = pnand %p3174_p4, %p4087_p2  ;;  %p3181_p1 = scmp.lt.s32.totalorder %s3179_s22, %s3173_s25 }
 0xc74   : > { %s3987_s2 = scalar_lea.hbm %s4088_s30, %s2435_s11 }
 0xc75   : > { %p3176_p5 = pneg %p3175_p8  ;;  %p3182_p11 = por %p3181_p1, %p3180_p10 }
 0xc77   : > { %p3183_p12 = pnand %p3182_p11, %p3176_p5 }
 0xcec   : > { %v2129_v23 = vpop.xlane.xlu1 %2128 }
 0xced   : > { %v2130_v28 = vmul.f32 0.0078125, %v2129_v23 }
 0xcef   : > { %v2131_v13 = vadd.f32 1e-05, %v2130_v28 }
 0xcf1   : > { %2859 = vrsqrt.f32 %v2131_v13 }
 0xcfb   : > { %v2860_v14 = vpop.eup %2859 }
 0xcfc   : > { %v2133_v15 = vmul.f32 %v2860_v14, %v2126_v1 }
 0xcfe   : > { %v2140_v17 = vmul.f32 %v2431_v11, %v2133_v15 }
 0xd00   : > { %v2147_v18 = vadd.f32 %v2432_v16, %v2140_v17 }
 0xd02   : > { %2148 = vst [vmem:[%s550_s10] sm:$0xff] %v2147_v18 }
 0xd03   : > { %3186 = shalt.err (!%p3183_p12)
}
 0xd04   : > { %s3187_s3 = scalar_lea.hbm %s3987_s2, 128  ;;  %s3191_s13 = scalar_lea.hbm %s4088_s30, 256 }
 0xd05   : > { %p3188_p13 = scmp.ne.s32.totalorder %s3987_s2, %s3187_s3  ;;  %p3192_p0 = scmp.lt.u32.totalorder %s3987_s2, %s4088_s30 }
 0xd06   : > { %p3193_p3 = scmp.lt.u32.totalorder %s3191_s13, %s3187_s3  ;;  %p3195_p4 = scmp.lt.u32.totalorder %s3187_s3, %s3987_s2 }
 0xd07   : > { %p3189_p7 = pnand %p3188_p13, %p4087_p2 }
 0xd08   : > { %p3194_p6 = por %p3193_p3, %p3192_p0 }
 0xd09   : > { %p3190_p9 = pneg %p3189_p7 }
 0xd0a   : > { %p3196_p8 = por %p3195_p4, %p3194_p6 }
 0xd0c   : > { %p3197_p5 = pnand %p3196_p8, %p3190_p9 }
 0xd0e   : > { %3200 = shalt.err (!%p3197_p5)
}
 0xd0f   : > { %2707 = dma.vmem_to_hbm [thread:$0]  (%p4087_p2), %s3989_s4, 128, %s3987_s2, %s2150_s0  }
 0xd10 PF: > { %s2196_s27 = sand.u32 1, %s3255_s17   ;;  %p4089_p10 = scmp.ne.s32.totalorder %s4069_s24, 0 }
 0xd11   : > { %p4090_p1 = scmp.ge.s32.totalorder %s3267_s20, 2  ;;  %s2197_s14 = scalar_lea.sflag [#allocation4], %s2196_s27 }
 0xd13   : > { %p2744_p11 = pnand %p4090_p1, %p4089_p10 }
 0xd15   : > { %3246 = dma.done.wait (!%p2744_p11), %s2197_s14, 128  }
 0xd16   : > { %3248 = vsyncadd (!%p2744_p11), %s2197_s14, 4294967168  ;;  %s2206_s25 = scalar_lea.sflag [#allocation21], %s2196_s27 }
 0xd17   : > { %3250 = dma.done.wait (!%p2744_p11), %s2206_s25, 512  }
 0xd18   : > { %3252 = vsyncadd (!%p2744_p11), %s2206_s25, 4294966784  ;;  %p35_p2 = scmp.ge.s32.totalorder %s3580_s16, 4   ;;  %s4091_s17 = smov %s3259_s18 }
 0xd19   : > { %s4092_s18 = smov %s3263_s19  ;;  %s4093_s19 = smov %s3591_s21 }
 0xd1a   : > { %s4094_s20 = smov %s3580_s16  ;;  %37 = sbr.rel (!%p35_p2) target bundleno = 20 (0x14), region = 167 }
 0xd21   :  { %2211 = vsyncpa [#allocation3], 1 }
 0xd22   :  { %2213 = vsyncpa [#allocation3 + $0x1], 1 }
 0xd23   :  { %2214 = vsyncpa [#allocation6], 1 }
 0xd24   :  { %2216 = vsyncpa [#allocation6 + $0x1], 1 }
 0xd25   :  { %2217 = vsyncpa [#allocation9], 1 }
 0xd26   :  { %2218 = vsyncpa [#allocation12], 1 }
 0xd27   :  { %2219 = vsyncpa [#allocation15], 1 }
 0xd28   :  { %2220 = vsyncpa [#allocation18], 1 }
 0xd29   :  { %2221 = vsyncpa [#allocation4], 1 }
 0xd2a   :  { %2223 = vsyncpa [#allocation4 + $0x1], 1 }
 0xd2b   :  { %2224 = vsyncpa [#allocation21], 1 }
 0xd2c   :  { %2226 = vsyncpa [#allocation21 + $0x1], 1 }

</bundles_post_ra>
